<compile_context>
chip_gen: v6e
topology: v6e:2x2x1
jax: 0.10.0
libtpu: 0.0.40
codegen_flags: <defaults>
</compile_context>

<pallas_src>
import functools
import math

import jax
import jax.numpy as jnp
from jax.experimental import pallas as pl
from jax.experimental.pallas import tpu as pltpu  # noqa: F401  (kept for TPU-specific tuning hooks)


# --------------------------- model configuration --------------------------- #

CFG = dict(
    vocab_size=100,
    max_position_embeddings=40,
    type_vocab_size=1,
    hidden_size=32,
    num_heads=2,
    num_layers=2,
    intermediate_size=64,
    pad_token_id=1,
    layer_norm_eps=1e-5,
    num_intent_classes=5,
)


# ------------------------------ fused kernel ------------------------------- #

def _fused_encoder_kernel(
    emb_ref, mask_ref,
    emb_ln_g_ref, emb_ln_b_ref,
    wqkv_ref, bqkv_ref, wo_ref, bo_ref,
    ln1_g_ref, ln1_b_ref,
    wi_ref, bi_ref, wo2_ref, bo2_ref,
    ln2_g_ref, ln2_b_ref,
    pool_w_ref, pool_b_ref, cls_w_ref, cls_b_ref,
    logits_ref, pred_ref,
    *, B, S, H, nH, Dh, L, eps, scale):
    """Whole PhoBERT-intent forward on VMEM-resident activations."""

    M = B * S
    inv_sqrt2 = 1.0 / math.sqrt(2.0)

    def layernorm(x, g, b):
        mu = jnp.mean(x, axis=-1, keepdims=True)
        var = jnp.mean((x - mu) ** 2, axis=-1, keepdims=True)
        return (x - mu) * jax.lax.rsqrt(var + eps) * g + b

    def matmul(x, w_bf16):
        # bf16 MXU operands, f32 accumulation.
        return jnp.dot(x.astype(jnp.bfloat16), w_bf16,
                       preferred_element_type=jnp.float32)

    # --- embedding LayerNorm (dropout is an eval-mode no-op) ---
    x = layernorm(emb_ref[...], emb_ln_g_ref[...], emb_ln_b_ref[...])      # (M, H) f32
    add_mask = mask_ref[...]                                               # (B, 1, S)

    # --- transformer layers (statically unrolled) ---
    for l in range(L):
        # fused QKV projection: one (M, H) x (H, 3H) matmul
        qkv = matmul(x, wqkv_ref[l]) + bqkv_ref[l:l + 1]                   # (M, 3H)
        q = qkv[:, 0 * H:1 * H].reshape(B, S, H)
        k = qkv[:, 1 * H:2 * H].reshape(B, S, H)
        v = qkv[:, 2 * H:3 * H].reshape(B, S, H)

        # multi-head attention: head split via lane slices, batched over B
        ctx_heads = []
        for h in range(nH):
            qh = q[..., h * Dh:(h + 1) * Dh].astype(jnp.bfloat16)          # (B, S, Dh)
            kh = k[..., h * Dh:(h + 1) * Dh].astype(jnp.bfloat16)
            vh = v[..., h * Dh:(h + 1) * Dh].astype(jnp.bfloat16)
            scores = jnp.einsum('bqd,bkd->bqk', qh, kh,
                                preferred_element_type=jnp.float32) * scale
            scores = scores + add_mask                                     # (B, S, S)
            scores = scores - jnp.max(scores, axis=-1, keepdims=True)
            p = jnp.exp(scores)
            p = p * pl.reciprocal(jnp.sum(p, axis=-1, keepdims=True), approx=True)
            ctx_h = jnp.einsum('bqk,bkd->bqd', p.astype(jnp.bfloat16), vh,
                               preferred_element_type=jnp.float32)         # (B, S, Dh)
            ctx_heads.append(ctx_h)
        ctx = jnp.concatenate(ctx_heads, axis=-1).reshape(M, H)            # (M, H)

        attn_out = matmul(ctx, wo_ref[l]) + bo_ref[l:l + 1]
        x = layernorm(attn_out + x, ln1_g_ref[l:l + 1], ln1_b_ref[l:l + 1])

        # feed-forward (exact erf GELU, matching HF RoBERTa)
        inter = matmul(x, wi_ref[l]) + bi_ref[l:l + 1]
        inter = 0.5 * inter * (1.0 + jax.lax.erf(inter * inv_sqrt2))
        ffn = matmul(inter, wo2_ref[l]) + bo2_ref[l:l + 1]
        x = layernorm(ffn + x, ln2_g_ref[l:l + 1], ln2_b_ref[l:l + 1])

    # --- pooler on the <s> token + intent classifier + softmax ---
    cls_rows = jnp.concatenate([x[b * S:b * S + 1, :] for b in range(B)], axis=0)  # (B, H)
    pooled = jnp.tanh(matmul(cls_rows, pool_w_ref[...]) + pool_b_ref[...])
    logits = matmul(pooled, cls_w_ref[...]) + cls_b_ref[...]               # (B, C)
    logits_ref[...] = logits

    z = logits - jnp.max(logits, axis=-1, keepdims=True)
    e = jnp.exp(z)
    pred_ref[...] = e / jnp.sum(e, axis=-1, keepdims=True)


# ------------------------------- parameters -------------------------------- #

def init_params(key, cfg):
    """Deterministic synthetic parameters (normal(0, 0.02) weights, zero biases)."""
    H, I = cfg["hidden_size"], cfg["intermediate_size"]

    def nrm(k, shape):
        return (0.02 * jax.random.normal(k, shape)).astype(jnp.float32)

    keys = iter(jax.random.split(key, 256))
    p = {
        "word_emb": nrm(next(keys), (cfg["vocab_size"], H)),
        "pos_emb": nrm(next(keys), (cfg["max_position_embeddings"], H)),
        "type_emb": nrm(next(keys), (cfg["type_vocab_size"], H)),
        "emb_ln_g": jnp.ones((H,), jnp.float32),
        "emb_ln_b": jnp.zeros((H,), jnp.float32),
        "layers": [],
        "pooler_w": nrm(next(keys), (H, H)),
        "pooler_b": jnp.zeros((H,), jnp.float32),
        "cls_w": nrm(next(keys), (H, cfg["num_intent_classes"])),
        "cls_b": jnp.zeros((cfg["num_intent_classes"],), jnp.float32),
    }
    for _ in range(cfg["num_layers"]):
        p["layers"].append({
            "wq": nrm(next(keys), (H, H)), "bq": jnp.zeros((H,), jnp.float32),
            "wk": nrm(next(keys), (H, H)), "bk": jnp.zeros((H,), jnp.float32),
            "wv": nrm(next(keys), (H, H)), "bv": jnp.zeros((H,), jnp.float32),
            "wo": nrm(next(keys), (H, H)), "bo": jnp.zeros((H,), jnp.float32),
            "ln1_g": jnp.ones((H,), jnp.float32), "ln1_b": jnp.zeros((H,), jnp.float32),
            "wi": nrm(next(keys), (H, I)), "bi": jnp.zeros((I,), jnp.float32),
            "wo2": nrm(next(keys), (I, H)), "bo2": jnp.zeros((H,), jnp.float32),
            "ln2_g": jnp.ones((H,), jnp.float32), "ln2_b": jnp.zeros((H,), jnp.float32),
        })
    return p


def pack_params(p, cfg):
    """One-time packing: stack per-layer weights, fuse QKV, cast matmul weights to bf16."""
    H = cfg["hidden_size"]
    C = cfg["num_intent_classes"]
    bf16 = jnp.bfloat16

    def stack(name, dtype=jnp.float32):
        return jnp.stack([lp[name] for lp in p["layers"]], axis=0).astype(dtype)

    return {
        "word_emb": p["word_emb"], "pos_emb": p["pos_emb"], "type_emb": p["type_emb"],
        "emb_ln_g": p["emb_ln_g"].reshape(1, H), "emb_ln_b": p["emb_ln_b"].reshape(1, H),
        "wqkv": jnp.stack([jnp.concatenate([lp["wq"], lp["wk"], lp["wv"]], axis=1)
                           for lp in p["layers"]], axis=0).astype(bf16),      # (L, H, 3H)
        "bqkv": jnp.stack([jnp.concatenate([lp["bq"], lp["bk"], lp["bv"]], axis=0)
                           for lp in p["layers"]], axis=0),                   # (L, 3H)
        "wo": stack("wo", bf16), "bo": stack("bo"),
        "ln1_g": stack("ln1_g"), "ln1_b": stack("ln1_b"),
        "wi": stack("wi", bf16), "bi": stack("bi"),
        "wo2": stack("wo2", bf16), "bo2": stack("bo2"),
        "ln2_g": stack("ln2_g"), "ln2_b": stack("ln2_b"),
        "pool_w": p["pooler_w"].astype(bf16), "pool_b": p["pooler_b"].reshape(1, H),
        "cls_w": p["cls_w"].astype(bf16), "cls_b": p["cls_b"].reshape(1, C),
    }


# ------------------------------ forward pass ------------------------------- #

def phobert_intent_forward(packed, input_ids, attention_mask, intent_label=None, cfg=CFG):
    B, S = input_ids.shape
    H = cfg["hidden_size"]
    nH = cfg["num_heads"]
    Dh = H // nH
    L = cfg["num_layers"]
    C = cfg["num_intent_classes"]
    eps = cfg["layer_norm_eps"]
    pad = cfg["pad_token_id"]
    scale = 1.0 / math.sqrt(Dh)

    # --- plain-JAX glue: embedding gathers + RoBERTa position ids ---
    not_pad = (input_ids != pad).astype(jnp.int32)
    position_ids = jnp.cumsum(not_pad, axis=1) * not_pad + pad
    token_type_ids = jnp.zeros_like(input_ids)

    emb = (packed["word_emb"][input_ids]
           + packed["pos_emb"][position_ids]
           + packed["type_emb"][token_type_ids]).reshape(B * S, H).astype(jnp.float32)

    # additive attention mask shared across heads: (B, 1, S)
    add_mask = ((1.0 - attention_mask.astype(jnp.float32)) * -10000.0)[:, None, :]

    kernel = functools.partial(
        _fused_encoder_kernel,
        B=B, S=S, H=H, nH=nH, Dh=Dh, L=L, eps=eps, scale=scale)

    # Single fused pallas_call: all refs are whole arrays resident in VMEM.
    intent_logits, intent_pred = pl.pallas_call(
        kernel,
        out_shape=(jax.ShapeDtypeStruct((B, C), jnp.float32),
                   jax.ShapeDtypeStruct((B, C), jnp.float32)),
    )(
        emb, add_mask,
        packed["emb_ln_g"], packed["emb_ln_b"],
        packed["wqkv"], packed["bqkv"], packed["wo"], packed["bo"],
        packed["ln1_g"], packed["ln1_b"],
        packed["wi"], packed["bi"], packed["wo2"], packed["bo2"],
        packed["ln2_g"], packed["ln2_b"],
        packed["pool_w"], packed["pool_b"], packed["cls_w"], packed["cls_b"],
    )

    # nn.CrossEntropyLoss (mean) — tiny scalar reduction, kept in plain JAX.
    intent_loss = 0
    if intent_label is not None:
        logz = jax.scipy.special.logsumexp(intent_logits, axis=-1)
        picked = jnp.take_along_axis(intent_logits, intent_label[:, None], axis=-1)[:, 0]
        intent_loss = jnp.mean(logz - picked)

    return {
        "intent_loss": intent_loss,
        "intent_pred": intent_pred,
        "intent_logits": intent_logits,
    }


# ---------------------------------- main ----------------------------------- #

if __name__ == "__main__":
    key = jax.random.PRNGKey(0)
    pkey, ikey, lkey = jax.random.split(key, 3)

    params = init_params(pkey, CFG)
    packed = pack_params(params, CFG)

    B, S = 2, 8
    input_ids = jax.random.randint(ikey, (B, S), 2, CFG["vocab_size"], dtype=jnp.int32)
    # make last 2 tokens of second example padding
    input_ids = input_ids.at[1, -2:].set(CFG["pad_token_id"])
    attention_mask = (input_ids != CFG["pad_token_id"]).astype(jnp.float32)
    intent_label = jax.random.randint(lkey, (B,), 0, CFG["num_intent_classes"], dtype=jnp.int32)

    out = phobert_intent_forward(packed, input_ids, attention_mask, intent_label)
    out = jax.tree_util.tree_map(jax.block_until_ready, out)

    assert out["intent_logits"].shape == (B, CFG["num_intent_classes"])
    assert out["intent_pred"].shape == (B, CFG["num_intent_classes"])
    assert jnp.allclose(jnp.sum(out["intent_pred"], axis=-1), 1.0, atol=1e-4)
    print("KERNEL_OK")
</pallas_src>

<mosaic_0001>
module attributes {stable_mosaic.version = 11 : i64} {
  func.func @_fused_encoder_kernel(%arg0: memref<16x32xf32, #tpu.memory_space<vmem>>, %arg1: memref<2x1x8xf32, #tpu.memory_space<vmem>>, %arg2: memref<1x32xf32, #tpu.memory_space<vmem>>, %arg3: memref<1x32xf32, #tpu.memory_space<vmem>>, %arg4: memref<2x32x96xbf16, #tpu.memory_space<vmem>>, %arg5: memref<2x96xf32, #tpu.memory_space<vmem>>, %arg6: memref<2x32x32xbf16, #tpu.memory_space<vmem>>, %arg7: memref<2x32xf32, #tpu.memory_space<vmem>>, %arg8: memref<2x32xf32, #tpu.memory_space<vmem>>, %arg9: memref<2x32xf32, #tpu.memory_space<vmem>>, %arg10: memref<2x32x64xbf16, #tpu.memory_space<vmem>>, %arg11: memref<2x64xf32, #tpu.memory_space<vmem>>, %arg12: memref<2x64x32xbf16, #tpu.memory_space<vmem>>, %arg13: memref<2x32xf32, #tpu.memory_space<vmem>>, %arg14: memref<2x32xf32, #tpu.memory_space<vmem>>, %arg15: memref<2x32xf32, #tpu.memory_space<vmem>>, %arg16: memref<32x32xbf16, #tpu.memory_space<vmem>>, %arg17: memref<1x32xf32, #tpu.memory_space<vmem>>, %arg18: memref<32x5xbf16, #tpu.memory_space<vmem>>, %arg19: memref<1x5xf32, #tpu.memory_space<vmem>>, %arg20: memref<2x5xf32, #tpu.memory_space<vmem>>, %arg21: memref<2x5xf32, #tpu.memory_space<vmem>>) attributes {dimension_semantics = [], scalar_prefetch = 0 : i64, scratch_operands = 0 : i64, tpu.core_type = #tpu.core_type<tc>} {
    %c0 = arith.constant 0 : index
    %c0_0 = arith.constant 0 : index
    %0 = vector.load %arg0[%c0, %c0_0] : memref<16x32xf32, #tpu.memory_space<vmem>>, vector<16x32xf32>
    %c0_1 = arith.constant 0 : index
    %c0_2 = arith.constant 0 : index
    %1 = vector.load %arg2[%c0_1, %c0_2] : memref<1x32xf32, #tpu.memory_space<vmem>>, vector<1x32xf32>
    %c0_3 = arith.constant 0 : index
    %c0_4 = arith.constant 0 : index
    %2 = vector.load %arg3[%c0_3, %c0_4] : memref<1x32xf32, #tpu.memory_space<vmem>>, vector<1x32xf32>
    %cst = arith.constant dense<0.000000e+00> : vector<16xf32>
    %3 = vector.multi_reduction <add>, %0, %cst [1] : vector<16x32xf32> to vector<16xf32>
    %4 = vector.shape_cast %3 : vector<16xf32> to vector<16x1xf32>
    %cst_5 = arith.constant 3.200000e+01 : f32
    %5 = vector.broadcast %cst_5 : f32 to vector<16x1xf32>
    %6 = arith.divf %4, %5 : vector<16x1xf32>
    %7 = vector.broadcast %6 : vector<16x1xf32> to vector<16x32xf32>
    %8 = arith.subf %0, %7 : vector<16x32xf32>
    %9 = arith.mulf %8, %8 : vector<16x32xf32>
    %cst_6 = arith.constant dense<0.000000e+00> : vector<16xf32>
    %10 = vector.multi_reduction <add>, %9, %cst_6 [1] : vector<16x32xf32> to vector<16xf32>
    %11 = vector.shape_cast %10 : vector<16xf32> to vector<16x1xf32>
    %cst_7 = arith.constant 3.200000e+01 : f32
    %12 = vector.broadcast %cst_7 : f32 to vector<16x1xf32>
    %13 = arith.divf %11, %12 : vector<16x1xf32>
    %14 = vector.broadcast %6 : vector<16x1xf32> to vector<16x32xf32>
    %15 = arith.subf %0, %14 : vector<16x32xf32>
    %cst_8 = arith.constant 9.99999974E-6 : f32
    %16 = vector.broadcast %cst_8 : f32 to vector<16x1xf32>
    %17 = arith.addf %13, %16 : vector<16x1xf32>
    %18 = math.rsqrt %17 : vector<16x1xf32>
    %19 = vector.broadcast %18 : vector<16x1xf32> to vector<16x32xf32>
    %20 = arith.mulf %15, %19 : vector<16x32xf32>
    %21 = vector.broadcast %1 : vector<1x32xf32> to vector<16x32xf32>
    %22 = arith.mulf %20, %21 : vector<16x32xf32>
    %23 = vector.broadcast %2 : vector<1x32xf32> to vector<16x32xf32>
    %24 = arith.addf %22, %23 : vector<16x32xf32>
    %c0_9 = arith.constant 0 : index
    %c0_10 = arith.constant 0 : index
    %c0_11 = arith.constant 0 : index
    %25 = vector.load %arg1[%c0_9, %c0_10, %c0_11] : memref<2x1x8xf32, #tpu.memory_space<vmem>>, vector<2x1x8xf32>
    %c0_12 = arith.constant 0 : index
    %c0_13 = arith.constant 0 : index
    %c0_14 = arith.constant 0 : index
    %26 = vector.load %arg4[%c0_12, %c0_13, %c0_14] : memref<2x32x96xbf16, #tpu.memory_space<vmem>>, vector<1x32x96xbf16>
    %27 = vector.shape_cast %26 : vector<1x32x96xbf16> to vector<32x96xbf16>
    %28 = arith.truncf %24 : vector<16x32xf32> to vector<16x32xbf16>
    %cst_15 = arith.constant dense<0.000000e+00> : vector<16x96xf32>
    %29 = tpu.matmul %28, %27, %cst_15 {dimension_numbers = #tpu.dot_dimension_numbers<[1], [0], [0], [1], [0, 0, 1, 1], [], []>} : vector<16x32xbf16>, vector<32x96xbf16>, vector<16x96xf32> -> vector<16x96xf32>
    %c0_16 = arith.constant 0 : index
    %c0_17 = arith.constant 0 : index
    %30 = vector.load %arg5[%c0_16, %c0_17] : memref<2x96xf32, #tpu.memory_space<vmem>>, vector<1x96xf32>
    %31 = vector.broadcast %30 : vector<1x96xf32> to vector<16x96xf32>
    %32 = arith.addf %29, %31 : vector<16x96xf32>
    %33 = vector.extract_strided_slice %32 {offsets = [0, 0], sizes = [16, 32], strides = [1, 1]} : vector<16x96xf32> to vector<16x32xf32>
    %34 = vector.shape_cast %33 : vector<16x32xf32> to vector<2x8x32xf32>
    %35 = vector.extract_strided_slice %32 {offsets = [0, 32], sizes = [16, 32], strides = [1, 1]} : vector<16x96xf32> to vector<16x32xf32>
    %36 = vector.shape_cast %35 : vector<16x32xf32> to vector<2x8x32xf32>
    %37 = vector.extract_strided_slice %32 {offsets = [0, 64], sizes = [16, 32], strides = [1, 1]} : vector<16x96xf32> to vector<16x32xf32>
    %38 = vector.shape_cast %37 : vector<16x32xf32> to vector<2x8x32xf32>
    %39 = vector.extract_strided_slice %34 {offsets = [0, 0, 0], sizes = [2, 8, 16], strides = [1, 1, 1]} : vector<2x8x32xf32> to vector<2x8x16xf32>
    %40 = arith.truncf %39 : vector<2x8x16xf32> to vector<2x8x16xbf16>
    %41 = vector.extract_strided_slice %36 {offsets = [0, 0, 0], sizes = [2, 8, 16], strides = [1, 1, 1]} : vector<2x8x32xf32> to vector<2x8x16xf32>
    %42 = arith.truncf %41 : vector<2x8x16xf32> to vector<2x8x16xbf16>
    %43 = vector.extract_strided_slice %38 {offsets = [0, 0, 0], sizes = [2, 8, 16], strides = [1, 1, 1]} : vector<2x8x32xf32> to vector<2x8x16xf32>
    %44 = arith.truncf %43 : vector<2x8x16xf32> to vector<2x8x16xbf16>
    "tpu.trace_start"() <{level = 10 : i32, message = "bqd,bkd->bqk"}> : () -> ()
    %cst_18 = arith.constant dense<0.000000e+00> : vector<2x8x8xf32>
    %45 = tpu.matmul %40, %42, %cst_18 {dimension_numbers = #tpu.dot_dimension_numbers<[2], [2], [1], [1], [0, 0, 0, 1, 1, 1], [0], [0]>} : vector<2x8x16xbf16>, vector<2x8x16xbf16>, vector<2x8x8xf32> -> vector<2x8x8xf32>
    "tpu.trace_stop"() : () -> ()
    %cst_19 = arith.constant 2.500000e-01 : f32
    %46 = vector.broadcast %cst_19 : f32 to vector<2x8x8xf32>
    %47 = arith.mulf %45, %46 : vector<2x8x8xf32>
    %48 = vector.broadcast %25 : vector<2x1x8xf32> to vector<2x8x8xf32>
    %49 = arith.addf %47, %48 : vector<2x8x8xf32>
    %cst_20 = arith.constant dense<0xFF800000> : vector<2x8xf32>
    %50 = vector.multi_reduction <maximumf>, %49, %cst_20 [2] : vector<2x8x8xf32> to vector<2x8xf32>
    %51 = vector.shape_cast %50 : vector<2x8xf32> to vector<2x8x1xf32>
    %52 = vector.broadcast %51 : vector<2x8x1xf32> to vector<2x8x8xf32>
    %53 = arith.subf %49, %52 : vector<2x8x8xf32>
    %54 = math.exp %53 : vector<2x8x8xf32>
    %cst_21 = arith.constant dense<0.000000e+00> : vector<2x8xf32>
    %55 = vector.multi_reduction <add>, %54, %cst_21 [2] : vector<2x8x8xf32> to vector<2x8xf32>
    %56 = vector.shape_cast %55 : vector<2x8xf32> to vector<2x8x1xf32>
    %57 = tpu.reciprocal %56 {approx = true} : vector<2x8x1xf32> -> vector<2x8x1xf32>
    %58 = vector.broadcast %57 : vector<2x8x1xf32> to vector<2x8x8xf32>
    %59 = arith.mulf %54, %58 : vector<2x8x8xf32>
    %60 = arith.truncf %59 : vector<2x8x8xf32> to vector<2x8x8xbf16>
    "tpu.trace_start"() <{level = 10 : i32, message = "bqk,bkd->bqd"}> : () -> ()
    %cst_22 = arith.constant dense<0.000000e+00> : vector<2x8x16xf32>
    %61 = tpu.matmul %60, %44, %cst_22 {dimension_numbers = #tpu.dot_dimension_numbers<[2], [1], [1], [2], [0, 0, 0, 1, 1, 2], [0], [0]>} : vector<2x8x8xbf16>, vector<2x8x16xbf16>, vector<2x8x16xf32> -> vector<2x8x16xf32>
    "tpu.trace_stop"() : () -> ()
    %62 = vector.extract_strided_slice %34 {offsets = [0, 0, 16], sizes = [2, 8, 16], strides = [1, 1, 1]} : vector<2x8x32xf32> to vector<2x8x16xf32>
    %63 = arith.truncf %62 : vector<2x8x16xf32> to vector<2x8x16xbf16>
    %64 = vector.extract_strided_slice %36 {offsets = [0, 0, 16], sizes = [2, 8, 16], strides = [1, 1, 1]} : vector<2x8x32xf32> to vector<2x8x16xf32>
    %65 = arith.truncf %64 : vector<2x8x16xf32> to vector<2x8x16xbf16>
    %66 = vector.extract_strided_slice %38 {offsets = [0, 0, 16], sizes = [2, 8, 16], strides = [1, 1, 1]} : vector<2x8x32xf32> to vector<2x8x16xf32>
    %67 = arith.truncf %66 : vector<2x8x16xf32> to vector<2x8x16xbf16>
    "tpu.trace_start"() <{level = 10 : i32, message = "bqd,bkd->bqk"}> : () -> ()
    %cst_23 = arith.constant dense<0.000000e+00> : vector<2x8x8xf32>
    %68 = tpu.matmul %63, %65, %cst_23 {dimension_numbers = #tpu.dot_dimension_numbers<[2], [2], [1], [1], [0, 0, 0, 1, 1, 1], [0], [0]>} : vector<2x8x16xbf16>, vector<2x8x16xbf16>, vector<2x8x8xf32> -> vector<2x8x8xf32>
    "tpu.trace_stop"() : () -> ()
    %cst_24 = arith.constant 2.500000e-01 : f32
    %69 = vector.broadcast %cst_24 : f32 to vector<2x8x8xf32>
    %70 = arith.mulf %68, %69 : vector<2x8x8xf32>
    %71 = vector.broadcast %25 : vector<2x1x8xf32> to vector<2x8x8xf32>
    %72 = arith.addf %70, %71 : vector<2x8x8xf32>
    %cst_25 = arith.constant dense<0xFF800000> : vector<2x8xf32>
    %73 = vector.multi_reduction <maximumf>, %72, %cst_25 [2] : vector<2x8x8xf32> to vector<2x8xf32>
    %74 = vector.shape_cast %73 : vector<2x8xf32> to vector<2x8x1xf32>
    %75 = vector.broadcast %74 : vector<2x8x1xf32> to vector<2x8x8xf32>
    %76 = arith.subf %72, %75 : vector<2x8x8xf32>
    %77 = math.exp %76 : vector<2x8x8xf32>
    %cst_26 = arith.constant dense<0.000000e+00> : vector<2x8xf32>
    %78 = vector.multi_reduction <add>, %77, %cst_26 [2] : vector<2x8x8xf32> to vector<2x8xf32>
    %79 = vector.shape_cast %78 : vector<2x8xf32> to vector<2x8x1xf32>
    %80 = tpu.reciprocal %79 {approx = true} : vector<2x8x1xf32> -> vector<2x8x1xf32>
    %81 = vector.broadcast %80 : vector<2x8x1xf32> to vector<2x8x8xf32>
    %82 = arith.mulf %77, %81 : vector<2x8x8xf32>
    %83 = arith.truncf %82 : vector<2x8x8xf32> to vector<2x8x8xbf16>
    "tpu.trace_start"() <{level = 10 : i32, message = "bqk,bkd->bqd"}> : () -> ()
    %cst_27 = arith.constant dense<0.000000e+00> : vector<2x8x16xf32>
    %84 = tpu.matmul %83, %67, %cst_27 {dimension_numbers = #tpu.dot_dimension_numbers<[2], [1], [1], [2], [0, 0, 0, 1, 1, 2], [0], [0]>} : vector<2x8x8xbf16>, vector<2x8x16xbf16>, vector<2x8x16xf32> -> vector<2x8x16xf32>
    "tpu.trace_stop"() : () -> ()
    %85 = tpu.concatenate %61, %84 in 2 : vector<2x8x16xf32>, vector<2x8x16xf32> -> vector<2x8x32xf32>
    %86 = vector.shape_cast %85 : vector<2x8x32xf32> to vector<16x32xf32>
    %c0_28 = arith.constant 0 : index
    %c0_29 = arith.constant 0 : index
    %c0_30 = arith.constant 0 : index
    %87 = vector.load %arg6[%c0_28, %c0_29, %c0_30] : memref<2x32x32xbf16, #tpu.memory_space<vmem>>, vector<1x32x32xbf16>
    %88 = vector.shape_cast %87 : vector<1x32x32xbf16> to vector<32x32xbf16>
    %89 = arith.truncf %86 : vector<16x32xf32> to vector<16x32xbf16>
    %cst_31 = arith.constant dense<0.000000e+00> : vector<16x32xf32>
    %90 = tpu.matmul %89, %88, %cst_31 {dimension_numbers = #tpu.dot_dimension_numbers<[1], [0], [0], [1], [0, 0, 1, 1], [], []>} : vector<16x32xbf16>, vector<32x32xbf16>, vector<16x32xf32> -> vector<16x32xf32>
    %c0_32 = arith.constant 0 : index
    %c0_33 = arith.constant 0 : index
    %91 = vector.load %arg7[%c0_32, %c0_33] : memref<2x32xf32, #tpu.memory_space<vmem>>, vector<1x32xf32>
    %92 = vector.broadcast %91 : vector<1x32xf32> to vector<16x32xf32>
    %93 = arith.addf %90, %92 : vector<16x32xf32>
    %94 = arith.addf %93, %24 : vector<16x32xf32>
    %c0_34 = arith.constant 0 : index
    %c0_35 = arith.constant 0 : index
    %95 = vector.load %arg8[%c0_34, %c0_35] : memref<2x32xf32, #tpu.memory_space<vmem>>, vector<1x32xf32>
    %c0_36 = arith.constant 0 : index
    %c0_37 = arith.constant 0 : index
    %96 = vector.load %arg9[%c0_36, %c0_37] : memref<2x32xf32, #tpu.memory_space<vmem>>, vector<1x32xf32>
    %cst_38 = arith.constant dense<0.000000e+00> : vector<16xf32>
    %97 = vector.multi_reduction <add>, %94, %cst_38 [1] : vector<16x32xf32> to vector<16xf32>
    %98 = vector.shape_cast %97 : vector<16xf32> to vector<16x1xf32>
    %cst_39 = arith.constant 3.200000e+01 : f32
    %99 = vector.broadcast %cst_39 : f32 to vector<16x1xf32>
    %100 = arith.divf %98, %99 : vector<16x1xf32>
    %101 = vector.broadcast %100 : vector<16x1xf32> to vector<16x32xf32>
    %102 = arith.subf %94, %101 : vector<16x32xf32>
    %103 = arith.mulf %102, %102 : vector<16x32xf32>
    %cst_40 = arith.constant dense<0.000000e+00> : vector<16xf32>
    %104 = vector.multi_reduction <add>, %103, %cst_40 [1] : vector<16x32xf32> to vector<16xf32>
    %105 = vector.shape_cast %104 : vector<16xf32> to vector<16x1xf32>
    %cst_41 = arith.constant 3.200000e+01 : f32
    %106 = vector.broadcast %cst_41 : f32 to vector<16x1xf32>
    %107 = arith.divf %105, %106 : vector<16x1xf32>
    %108 = vector.broadcast %100 : vector<16x1xf32> to vector<16x32xf32>
    %109 = arith.subf %94, %108 : vector<16x32xf32>
    %cst_42 = arith.constant 9.99999974E-6 : f32
    %110 = vector.broadcast %cst_42 : f32 to vector<16x1xf32>
    %111 = arith.addf %107, %110 : vector<16x1xf32>
    %112 = math.rsqrt %111 : vector<16x1xf32>
    %113 = vector.broadcast %112 : vector<16x1xf32> to vector<16x32xf32>
    %114 = arith.mulf %109, %113 : vector<16x32xf32>
    %115 = vector.broadcast %95 : vector<1x32xf32> to vector<16x32xf32>
    %116 = arith.mulf %114, %115 : vector<16x32xf32>
    %117 = vector.broadcast %96 : vector<1x32xf32> to vector<16x32xf32>
    %118 = arith.addf %116, %117 : vector<16x32xf32>
    %c0_43 = arith.constant 0 : index
    %c0_44 = arith.constant 0 : index
    %c0_45 = arith.constant 0 : index
    %119 = vector.load %arg10[%c0_43, %c0_44, %c0_45] : memref<2x32x64xbf16, #tpu.memory_space<vmem>>, vector<1x32x64xbf16>
    %120 = vector.shape_cast %119 : vector<1x32x64xbf16> to vector<32x64xbf16>
    %121 = arith.truncf %118 : vector<16x32xf32> to vector<16x32xbf16>
    %cst_46 = arith.constant dense<0.000000e+00> : vector<16x64xf32>
    %122 = tpu.matmul %121, %120, %cst_46 {dimension_numbers = #tpu.dot_dimension_numbers<[1], [0], [0], [1], [0, 0, 1, 1], [], []>} : vector<16x32xbf16>, vector<32x64xbf16>, vector<16x64xf32> -> vector<16x64xf32>
    %c0_47 = arith.constant 0 : index
    %c0_48 = arith.constant 0 : index
    %123 = vector.load %arg11[%c0_47, %c0_48] : memref<2x64xf32, #tpu.memory_space<vmem>>, vector<1x64xf32>
    %124 = vector.broadcast %123 : vector<1x64xf32> to vector<16x64xf32>
    %125 = arith.addf %122, %124 : vector<16x64xf32>
    %cst_49 = arith.constant 5.000000e-01 : f32
    %126 = vector.broadcast %cst_49 : f32 to vector<16x64xf32>
    %127 = arith.mulf %126, %125 : vector<16x64xf32>
    %cst_50 = arith.constant 0.707106769 : f32
    %128 = vector.broadcast %cst_50 : f32 to vector<16x64xf32>
    %129 = arith.mulf %125, %128 : vector<16x64xf32>
    %130 = math.erf %129 : vector<16x64xf32>
    %cst_51 = arith.constant 1.000000e+00 : f32
    %131 = vector.broadcast %cst_51 : f32 to vector<16x64xf32>
    %132 = arith.addf %131, %130 : vector<16x64xf32>
    %133 = arith.mulf %127, %132 : vector<16x64xf32>
    %c0_52 = arith.constant 0 : index
    %c0_53 = arith.constant 0 : index
    %c0_54 = arith.constant 0 : index
    %134 = vector.load %arg12[%c0_52, %c0_53, %c0_54] : memref<2x64x32xbf16, #tpu.memory_space<vmem>>, vector<1x64x32xbf16>
    %135 = vector.shape_cast %134 : vector<1x64x32xbf16> to vector<64x32xbf16>
    %136 = arith.truncf %133 : vector<16x64xf32> to vector<16x64xbf16>
    %cst_55 = arith.constant dense<0.000000e+00> : vector<16x32xf32>
    %137 = tpu.matmul %136, %135, %cst_55 {dimension_numbers = #tpu.dot_dimension_numbers<[1], [0], [0], [1], [0, 0, 1, 1], [], []>} : vector<16x64xbf16>, vector<64x32xbf16>, vector<16x32xf32> -> vector<16x32xf32>
    %c0_56 = arith.constant 0 : index
    %c0_57 = arith.constant 0 : index
    %138 = vector.load %arg13[%c0_56, %c0_57] : memref<2x32xf32, #tpu.memory_space<vmem>>, vector<1x32xf32>
    %139 = vector.broadcast %138 : vector<1x32xf32> to vector<16x32xf32>
    %140 = arith.addf %137, %139 : vector<16x32xf32>
    %141 = arith.addf %140, %118 : vector<16x32xf32>
    %c0_58 = arith.constant 0 : index
    %c0_59 = arith.constant 0 : index
    %142 = vector.load %arg14[%c0_58, %c0_59] : memref<2x32xf32, #tpu.memory_space<vmem>>, vector<1x32xf32>
    %c0_60 = arith.constant 0 : index
    %c0_61 = arith.constant 0 : index
    %143 = vector.load %arg15[%c0_60, %c0_61] : memref<2x32xf32, #tpu.memory_space<vmem>>, vector<1x32xf32>
    %cst_62 = arith.constant dense<0.000000e+00> : vector<16xf32>
    %144 = vector.multi_reduction <add>, %141, %cst_62 [1] : vector<16x32xf32> to vector<16xf32>
    %145 = vector.shape_cast %144 : vector<16xf32> to vector<16x1xf32>
    %cst_63 = arith.constant 3.200000e+01 : f32
    %146 = vector.broadcast %cst_63 : f32 to vector<16x1xf32>
    %147 = arith.divf %145, %146 : vector<16x1xf32>
    %148 = vector.broadcast %147 : vector<16x1xf32> to vector<16x32xf32>
    %149 = arith.subf %141, %148 : vector<16x32xf32>
    %150 = arith.mulf %149, %149 : vector<16x32xf32>
    %cst_64 = arith.constant dense<0.000000e+00> : vector<16xf32>
    %151 = vector.multi_reduction <add>, %150, %cst_64 [1] : vector<16x32xf32> to vector<16xf32>
    %152 = vector.shape_cast %151 : vector<16xf32> to vector<16x1xf32>
    %cst_65 = arith.constant 3.200000e+01 : f32
    %153 = vector.broadcast %cst_65 : f32 to vector<16x1xf32>
    %154 = arith.divf %152, %153 : vector<16x1xf32>
    %155 = vector.broadcast %147 : vector<16x1xf32> to vector<16x32xf32>
    %156 = arith.subf %141, %155 : vector<16x32xf32>
    %cst_66 = arith.constant 9.99999974E-6 : f32
    %157 = vector.broadcast %cst_66 : f32 to vector<16x1xf32>
    %158 = arith.addf %154, %157 : vector<16x1xf32>
    %159 = math.rsqrt %158 : vector<16x1xf32>
    %160 = vector.broadcast %159 : vector<16x1xf32> to vector<16x32xf32>
    %161 = arith.mulf %156, %160 : vector<16x32xf32>
    %162 = vector.broadcast %142 : vector<1x32xf32> to vector<16x32xf32>
    %163 = arith.mulf %161, %162 : vector<16x32xf32>
    %164 = vector.broadcast %143 : vector<1x32xf32> to vector<16x32xf32>
    %165 = arith.addf %163, %164 : vector<16x32xf32>
    %c1 = arith.constant 1 : index
    %c0_67 = arith.constant 0 : index
    %c0_68 = arith.constant 0 : index
    %166 = vector.load %arg4[%c1, %c0_67, %c0_68] : memref<2x32x96xbf16, #tpu.memory_space<vmem>>, vector<1x32x96xbf16>
    %167 = vector.shape_cast %166 : vector<1x32x96xbf16> to vector<32x96xbf16>
    %168 = arith.truncf %165 : vector<16x32xf32> to vector<16x32xbf16>
    %cst_69 = arith.constant dense<0.000000e+00> : vector<16x96xf32>
    %169 = tpu.matmul %168, %167, %cst_69 {dimension_numbers = #tpu.dot_dimension_numbers<[1], [0], [0], [1], [0, 0, 1, 1], [], []>} : vector<16x32xbf16>, vector<32x96xbf16>, vector<16x96xf32> -> vector<16x96xf32>
    %c1_70 = arith.constant 1 : index
    %c0_71 = arith.constant 0 : index
    %170 = vector.load %arg5[%c1_70, %c0_71] : memref<2x96xf32, #tpu.memory_space<vmem>>, vector<1x96xf32>
    %171 = vector.broadcast %170 : vector<1x96xf32> to vector<16x96xf32>
    %172 = arith.addf %169, %171 : vector<16x96xf32>
    %173 = vector.extract_strided_slice %172 {offsets = [0, 0], sizes = [16, 32], strides = [1, 1]} : vector<16x96xf32> to vector<16x32xf32>
    %174 = vector.shape_cast %173 : vector<16x32xf32> to vector<2x8x32xf32>
    %175 = vector.extract_strided_slice %172 {offsets = [0, 32], sizes = [16, 32], strides = [1, 1]} : vector<16x96xf32> to vector<16x32xf32>
    %176 = vector.shape_cast %175 : vector<16x32xf32> to vector<2x8x32xf32>
    %177 = vector.extract_strided_slice %172 {offsets = [0, 64], sizes = [16, 32], strides = [1, 1]} : vector<16x96xf32> to vector<16x32xf32>
    %178 = vector.shape_cast %177 : vector<16x32xf32> to vector<2x8x32xf32>
    %179 = vector.extract_strided_slice %174 {offsets = [0, 0, 0], sizes = [2, 8, 16], strides = [1, 1, 1]} : vector<2x8x32xf32> to vector<2x8x16xf32>
    %180 = arith.truncf %179 : vector<2x8x16xf32> to vector<2x8x16xbf16>
    %181 = vector.extract_strided_slice %176 {offsets = [0, 0, 0], sizes = [2, 8, 16], strides = [1, 1, 1]} : vector<2x8x32xf32> to vector<2x8x16xf32>
    %182 = arith.truncf %181 : vector<2x8x16xf32> to vector<2x8x16xbf16>
    %183 = vector.extract_strided_slice %178 {offsets = [0, 0, 0], sizes = [2, 8, 16], strides = [1, 1, 1]} : vector<2x8x32xf32> to vector<2x8x16xf32>
    %184 = arith.truncf %183 : vector<2x8x16xf32> to vector<2x8x16xbf16>
    "tpu.trace_start"() <{level = 10 : i32, message = "bqd,bkd->bqk"}> : () -> ()
    %cst_72 = arith.constant dense<0.000000e+00> : vector<2x8x8xf32>
    %185 = tpu.matmul %180, %182, %cst_72 {dimension_numbers = #tpu.dot_dimension_numbers<[2], [2], [1], [1], [0, 0, 0, 1, 1, 1], [0], [0]>} : vector<2x8x16xbf16>, vector<2x8x16xbf16>, vector<2x8x8xf32> -> vector<2x8x8xf32>
    "tpu.trace_stop"() : () -> ()
    %cst_73 = arith.constant 2.500000e-01 : f32
    %186 = vector.broadcast %cst_73 : f32 to vector<2x8x8xf32>
    %187 = arith.mulf %185, %186 : vector<2x8x8xf32>
    %188 = vector.broadcast %25 : vector<2x1x8xf32> to vector<2x8x8xf32>
    %189 = arith.addf %187, %188 : vector<2x8x8xf32>
    %cst_74 = arith.constant dense<0xFF800000> : vector<2x8xf32>
    %190 = vector.multi_reduction <maximumf>, %189, %cst_74 [2] : vector<2x8x8xf32> to vector<2x8xf32>
    %191 = vector.shape_cast %190 : vector<2x8xf32> to vector<2x8x1xf32>
    %192 = vector.broadcast %191 : vector<2x8x1xf32> to vector<2x8x8xf32>
    %193 = arith.subf %189, %192 : vector<2x8x8xf32>
    %194 = math.exp %193 : vector<2x8x8xf32>
    %cst_75 = arith.constant dense<0.000000e+00> : vector<2x8xf32>
    %195 = vector.multi_reduction <add>, %194, %cst_75 [2] : vector<2x8x8xf32> to vector<2x8xf32>
    %196 = vector.shape_cast %195 : vector<2x8xf32> to vector<2x8x1xf32>
    %197 = tpu.reciprocal %196 {approx = true} : vector<2x8x1xf32> -> vector<2x8x1xf32>
    %198 = vector.broadcast %197 : vector<2x8x1xf32> to vector<2x8x8xf32>
    %199 = arith.mulf %194, %198 : vector<2x8x8xf32>
    %200 = arith.truncf %199 : vector<2x8x8xf32> to vector<2x8x8xbf16>
    "tpu.trace_start"() <{level = 10 : i32, message = "bqk,bkd->bqd"}> : () -> ()
    %cst_76 = arith.constant dense<0.000000e+00> : vector<2x8x16xf32>
    %201 = tpu.matmul %200, %184, %cst_76 {dimension_numbers = #tpu.dot_dimension_numbers<[2], [1], [1], [2], [0, 0, 0, 1, 1, 2], [0], [0]>} : vector<2x8x8xbf16>, vector<2x8x16xbf16>, vector<2x8x16xf32> -> vector<2x8x16xf32>
    "tpu.trace_stop"() : () -> ()
    %202 = vector.extract_strided_slice %174 {offsets = [0, 0, 16], sizes = [2, 8, 16], strides = [1, 1, 1]} : vector<2x8x32xf32> to vector<2x8x16xf32>
    %203 = arith.truncf %202 : vector<2x8x16xf32> to vector<2x8x16xbf16>
    %204 = vector.extract_strided_slice %176 {offsets = [0, 0, 16], sizes = [2, 8, 16], strides = [1, 1, 1]} : vector<2x8x32xf32> to vector<2x8x16xf32>
    %205 = arith.truncf %204 : vector<2x8x16xf32> to vector<2x8x16xbf16>
    %206 = vector.extract_strided_slice %178 {offsets = [0, 0, 16], sizes = [2, 8, 16], strides = [1, 1, 1]} : vector<2x8x32xf32> to vector<2x8x16xf32>
    %207 = arith.truncf %206 : vector<2x8x16xf32> to vector<2x8x16xbf16>
    "tpu.trace_start"() <{level = 10 : i32, message = "bqd,bkd->bqk"}> : () -> ()
    %cst_77 = arith.constant dense<0.000000e+00> : vector<2x8x8xf32>
    %208 = tpu.matmul %203, %205, %cst_77 {dimension_numbers = #tpu.dot_dimension_numbers<[2], [2], [1], [1], [0, 0, 0, 1, 1, 1], [0], [0]>} : vector<2x8x16xbf16>, vector<2x8x16xbf16>, vector<2x8x8xf32> -> vector<2x8x8xf32>
    "tpu.trace_stop"() : () -> ()
    %cst_78 = arith.constant 2.500000e-01 : f32
    %209 = vector.broadcast %cst_78 : f32 to vector<2x8x8xf32>
    %210 = arith.mulf %208, %209 : vector<2x8x8xf32>
    %211 = vector.broadcast %25 : vector<2x1x8xf32> to vector<2x8x8xf32>
    %212 = arith.addf %210, %211 : vector<2x8x8xf32>
    %cst_79 = arith.constant dense<0xFF800000> : vector<2x8xf32>
    %213 = vector.multi_reduction <maximumf>, %212, %cst_79 [2] : vector<2x8x8xf32> to vector<2x8xf32>
    %214 = vector.shape_cast %213 : vector<2x8xf32> to vector<2x8x1xf32>
    %215 = vector.broadcast %214 : vector<2x8x1xf32> to vector<2x8x8xf32>
    %216 = arith.subf %212, %215 : vector<2x8x8xf32>
    %217 = math.exp %216 : vector<2x8x8xf32>
    %cst_80 = arith.constant dense<0.000000e+00> : vector<2x8xf32>
    %218 = vector.multi_reduction <add>, %217, %cst_80 [2] : vector<2x8x8xf32> to vector<2x8xf32>
    %219 = vector.shape_cast %218 : vector<2x8xf32> to vector<2x8x1xf32>
    %220 = tpu.reciprocal %219 {approx = true} : vector<2x8x1xf32> -> vector<2x8x1xf32>
    %221 = vector.broadcast %220 : vector<2x8x1xf32> to vector<2x8x8xf32>
    %222 = arith.mulf %217, %221 : vector<2x8x8xf32>
    %223 = arith.truncf %222 : vector<2x8x8xf32> to vector<2x8x8xbf16>
    "tpu.trace_start"() <{level = 10 : i32, message = "bqk,bkd->bqd"}> : () -> ()
    %cst_81 = arith.constant dense<0.000000e+00> : vector<2x8x16xf32>
    %224 = tpu.matmul %223, %207, %cst_81 {dimension_numbers = #tpu.dot_dimension_numbers<[2], [1], [1], [2], [0, 0, 0, 1, 1, 2], [0], [0]>} : vector<2x8x8xbf16>, vector<2x8x16xbf16>, vector<2x8x16xf32> -> vector<2x8x16xf32>
    "tpu.trace_stop"() : () -> ()
    %225 = tpu.concatenate %201, %224 in 2 : vector<2x8x16xf32>, vector<2x8x16xf32> -> vector<2x8x32xf32>
    %226 = vector.shape_cast %225 : vector<2x8x32xf32> to vector<16x32xf32>
    %c1_82 = arith.constant 1 : index
    %c0_83 = arith.constant 0 : index
    %c0_84 = arith.constant 0 : index
    %227 = vector.load %arg6[%c1_82, %c0_83, %c0_84] : memref<2x32x32xbf16, #tpu.memory_space<vmem>>, vector<1x32x32xbf16>
    %228 = vector.shape_cast %227 : vector<1x32x32xbf16> to vector<32x32xbf16>
    %229 = arith.truncf %226 : vector<16x32xf32> to vector<16x32xbf16>
    %cst_85 = arith.constant dense<0.000000e+00> : vector<16x32xf32>
    %230 = tpu.matmul %229, %228, %cst_85 {dimension_numbers = #tpu.dot_dimension_numbers<[1], [0], [0], [1], [0, 0, 1, 1], [], []>} : vector<16x32xbf16>, vector<32x32xbf16>, vector<16x32xf32> -> vector<16x32xf32>
    %c1_86 = arith.constant 1 : index
    %c0_87 = arith.constant 0 : index
    %231 = vector.load %arg7[%c1_86, %c0_87] : memref<2x32xf32, #tpu.memory_space<vmem>>, vector<1x32xf32>
    %232 = vector.broadcast %231 : vector<1x32xf32> to vector<16x32xf32>
    %233 = arith.addf %230, %232 : vector<16x32xf32>
    %234 = arith.addf %233, %165 : vector<16x32xf32>
    %c1_88 = arith.constant 1 : index
    %c0_89 = arith.constant 0 : index
    %235 = vector.load %arg8[%c1_88, %c0_89] : memref<2x32xf32, #tpu.memory_space<vmem>>, vector<1x32xf32>
    %c1_90 = arith.constant 1 : index
    %c0_91 = arith.constant 0 : index
    %236 = vector.load %arg9[%c1_90, %c0_91] : memref<2x32xf32, #tpu.memory_space<vmem>>, vector<1x32xf32>
    %cst_92 = arith.constant dense<0.000000e+00> : vector<16xf32>
    %237 = vector.multi_reduction <add>, %234, %cst_92 [1] : vector<16x32xf32> to vector<16xf32>
    %238 = vector.shape_cast %237 : vector<16xf32> to vector<16x1xf32>
    %cst_93 = arith.constant 3.200000e+01 : f32
    %239 = vector.broadcast %cst_93 : f32 to vector<16x1xf32>
    %240 = arith.divf %238, %239 : vector<16x1xf32>
    %241 = vector.broadcast %240 : vector<16x1xf32> to vector<16x32xf32>
    %242 = arith.subf %234, %241 : vector<16x32xf32>
    %243 = arith.mulf %242, %242 : vector<16x32xf32>
    %cst_94 = arith.constant dense<0.000000e+00> : vector<16xf32>
    %244 = vector.multi_reduction <add>, %243, %cst_94 [1] : vector<16x32xf32> to vector<16xf32>
    %245 = vector.shape_cast %244 : vector<16xf32> to vector<16x1xf32>
    %cst_95 = arith.constant 3.200000e+01 : f32
    %246 = vector.broadcast %cst_95 : f32 to vector<16x1xf32>
    %247 = arith.divf %245, %246 : vector<16x1xf32>
    %248 = vector.broadcast %240 : vector<16x1xf32> to vector<16x32xf32>
    %249 = arith.subf %234, %248 : vector<16x32xf32>
    %cst_96 = arith.constant 9.99999974E-6 : f32
    %250 = vector.broadcast %cst_96 : f32 to vector<16x1xf32>
    %251 = arith.addf %247, %250 : vector<16x1xf32>
    %252 = math.rsqrt %251 : vector<16x1xf32>
    %253 = vector.broadcast %252 : vector<16x1xf32> to vector<16x32xf32>
    %254 = arith.mulf %249, %253 : vector<16x32xf32>
    %255 = vector.broadcast %235 : vector<1x32xf32> to vector<16x32xf32>
    %256 = arith.mulf %254, %255 : vector<16x32xf32>
    %257 = vector.broadcast %236 : vector<1x32xf32> to vector<16x32xf32>
    %258 = arith.addf %256, %257 : vector<16x32xf32>
    %c1_97 = arith.constant 1 : index
    %c0_98 = arith.constant 0 : index
    %c0_99 = arith.constant 0 : index
    %259 = vector.load %arg10[%c1_97, %c0_98, %c0_99] : memref<2x32x64xbf16, #tpu.memory_space<vmem>>, vector<1x32x64xbf16>
    %260 = vector.shape_cast %259 : vector<1x32x64xbf16> to vector<32x64xbf16>
    %261 = arith.truncf %258 : vector<16x32xf32> to vector<16x32xbf16>
    %cst_100 = arith.constant dense<0.000000e+00> : vector<16x64xf32>
    %262 = tpu.matmul %261, %260, %cst_100 {dimension_numbers = #tpu.dot_dimension_numbers<[1], [0], [0], [1], [0, 0, 1, 1], [], []>} : vector<16x32xbf16>, vector<32x64xbf16>, vector<16x64xf32> -> vector<16x64xf32>
    %c1_101 = arith.constant 1 : index
    %c0_102 = arith.constant 0 : index
    %263 = vector.load %arg11[%c1_101, %c0_102] : memref<2x64xf32, #tpu.memory_space<vmem>>, vector<1x64xf32>
    %264 = vector.broadcast %263 : vector<1x64xf32> to vector<16x64xf32>
    %265 = arith.addf %262, %264 : vector<16x64xf32>
    %cst_103 = arith.constant 5.000000e-01 : f32
    %266 = vector.broadcast %cst_103 : f32 to vector<16x64xf32>
    %267 = arith.mulf %266, %265 : vector<16x64xf32>
    %cst_104 = arith.constant 0.707106769 : f32
    %268 = vector.broadcast %cst_104 : f32 to vector<16x64xf32>
    %269 = arith.mulf %265, %268 : vector<16x64xf32>
    %270 = math.erf %269 : vector<16x64xf32>
    %cst_105 = arith.constant 1.000000e+00 : f32
    %271 = vector.broadcast %cst_105 : f32 to vector<16x64xf32>
    %272 = arith.addf %271, %270 : vector<16x64xf32>
    %273 = arith.mulf %267, %272 : vector<16x64xf32>
    %c1_106 = arith.constant 1 : index
    %c0_107 = arith.constant 0 : index
    %c0_108 = arith.constant 0 : index
    %274 = vector.load %arg12[%c1_106, %c0_107, %c0_108] : memref<2x64x32xbf16, #tpu.memory_space<vmem>>, vector<1x64x32xbf16>
    %275 = vector.shape_cast %274 : vector<1x64x32xbf16> to vector<64x32xbf16>
    %276 = arith.truncf %273 : vector<16x64xf32> to vector<16x64xbf16>
    %cst_109 = arith.constant dense<0.000000e+00> : vector<16x32xf32>
    %277 = tpu.matmul %276, %275, %cst_109 {dimension_numbers = #tpu.dot_dimension_numbers<[1], [0], [0], [1], [0, 0, 1, 1], [], []>} : vector<16x64xbf16>, vector<64x32xbf16>, vector<16x32xf32> -> vector<16x32xf32>
    %c1_110 = arith.constant 1 : index
    %c0_111 = arith.constant 0 : index
    %278 = vector.load %arg13[%c1_110, %c0_111] : memref<2x32xf32, #tpu.memory_space<vmem>>, vector<1x32xf32>
    %279 = vector.broadcast %278 : vector<1x32xf32> to vector<16x32xf32>
    %280 = arith.addf %277, %279 : vector<16x32xf32>
    %281 = arith.addf %280, %258 : vector<16x32xf32>
    %c1_112 = arith.constant 1 : index
    %c0_113 = arith.constant 0 : index
    %282 = vector.load %arg14[%c1_112, %c0_113] : memref<2x32xf32, #tpu.memory_space<vmem>>, vector<1x32xf32>
    %c1_114 = arith.constant 1 : index
    %c0_115 = arith.constant 0 : index
    %283 = vector.load %arg15[%c1_114, %c0_115] : memref<2x32xf32, #tpu.memory_space<vmem>>, vector<1x32xf32>
    %cst_116 = arith.constant dense<0.000000e+00> : vector<16xf32>
    %284 = vector.multi_reduction <add>, %281, %cst_116 [1] : vector<16x32xf32> to vector<16xf32>
    %285 = vector.shape_cast %284 : vector<16xf32> to vector<16x1xf32>
    %cst_117 = arith.constant 3.200000e+01 : f32
    %286 = vector.broadcast %cst_117 : f32 to vector<16x1xf32>
    %287 = arith.divf %285, %286 : vector<16x1xf32>
    %288 = vector.broadcast %287 : vector<16x1xf32> to vector<16x32xf32>
    %289 = arith.subf %281, %288 : vector<16x32xf32>
    %290 = arith.mulf %289, %289 : vector<16x32xf32>
    %cst_118 = arith.constant dense<0.000000e+00> : vector<16xf32>
    %291 = vector.multi_reduction <add>, %290, %cst_118 [1] : vector<16x32xf32> to vector<16xf32>
    %292 = vector.shape_cast %291 : vector<16xf32> to vector<16x1xf32>
    %cst_119 = arith.constant 3.200000e+01 : f32
    %293 = vector.broadcast %cst_119 : f32 to vector<16x1xf32>
    %294 = arith.divf %292, %293 : vector<16x1xf32>
    %295 = vector.broadcast %287 : vector<16x1xf32> to vector<16x32xf32>
    %296 = arith.subf %281, %295 : vector<16x32xf32>
    %cst_120 = arith.constant 9.99999974E-6 : f32
    %297 = vector.broadcast %cst_120 : f32 to vector<16x1xf32>
    %298 = arith.addf %294, %297 : vector<16x1xf32>
    %299 = math.rsqrt %298 : vector<16x1xf32>
    %300 = vector.broadcast %299 : vector<16x1xf32> to vector<16x32xf32>
    %301 = arith.mulf %296, %300 : vector<16x32xf32>
    %302 = vector.broadcast %282 : vector<1x32xf32> to vector<16x32xf32>
    %303 = arith.mulf %301, %302 : vector<16x32xf32>
    %304 = vector.broadcast %283 : vector<1x32xf32> to vector<16x32xf32>
    %305 = arith.addf %303, %304 : vector<16x32xf32>
    %306 = vector.extract_strided_slice %305 {offsets = [0, 0], sizes = [1, 32], strides = [1, 1]} : vector<16x32xf32> to vector<1x32xf32>
    %307 = vector.extract_strided_slice %305 {offsets = [8, 0], sizes = [1, 32], strides = [1, 1]} : vector<16x32xf32> to vector<1x32xf32>
    %308 = tpu.concatenate %306, %307 in 0 : vector<1x32xf32>, vector<1x32xf32> -> vector<2x32xf32>
    %c0_121 = arith.constant 0 : index
    %c0_122 = arith.constant 0 : index
    %309 = vector.load %arg16[%c0_121, %c0_122] : memref<32x32xbf16, #tpu.memory_space<vmem>>, vector<32x32xbf16>
    %310 = arith.truncf %308 : vector<2x32xf32> to vector<2x32xbf16>
    %cst_123 = arith.constant dense<0.000000e+00> : vector<2x32xf32>
    %311 = tpu.matmul %310, %309, %cst_123 {dimension_numbers = #tpu.dot_dimension_numbers<[1], [0], [0], [1], [0, 0, 1, 1], [], []>} : vector<2x32xbf16>, vector<32x32xbf16>, vector<2x32xf32> -> vector<2x32xf32>
    %c0_124 = arith.constant 0 : index
    %c0_125 = arith.constant 0 : index
    %312 = vector.load %arg17[%c0_124, %c0_125] : memref<1x32xf32, #tpu.memory_space<vmem>>, vector<1x32xf32>
    %313 = vector.broadcast %312 : vector<1x32xf32> to vector<2x32xf32>
    %314 = arith.addf %311, %313 : vector<2x32xf32>
    %315 = math.tanh %314 : vector<2x32xf32>
    %c0_126 = arith.constant 0 : index
    %c0_127 = arith.constant 0 : index
    %316 = vector.load %arg18[%c0_126, %c0_127] : memref<32x5xbf16, #tpu.memory_space<vmem>>, vector<32x5xbf16>
    %317 = arith.truncf %315 : vector<2x32xf32> to vector<2x32xbf16>
    %cst_128 = arith.constant dense<0.000000e+00> : vector<2x5xf32>
    %318 = tpu.matmul %317, %316, %cst_128 {dimension_numbers = #tpu.dot_dimension_numbers<[1], [0], [0], [1], [0, 0, 1, 1], [], []>} : vector<2x32xbf16>, vector<32x5xbf16>, vector<2x5xf32> -> vector<2x5xf32>
    %c0_129 = arith.constant 0 : index
    %c0_130 = arith.constant 0 : index
    %319 = vector.load %arg19[%c0_129, %c0_130] : memref<1x5xf32, #tpu.memory_space<vmem>>, vector<1x5xf32>
    %320 = vector.broadcast %319 : vector<1x5xf32> to vector<2x5xf32>
    %321 = arith.addf %318, %320 : vector<2x5xf32>
    %c0_131 = arith.constant 0 : index
    %c0_132 = arith.constant 0 : index
    %322 = vector.load %arg20[%c0_131, %c0_132] : memref<2x5xf32, #tpu.memory_space<vmem>>, vector<2x5xf32>
    tpu.vector_store %arg20[%c0_131, %c0_132], %321 {strides = array<i32>} : memref<2x5xf32, #tpu.memory_space<vmem>>, vector<2x5xf32>,
    %cst_133 = arith.constant dense<0xFF800000> : vector<2xf32>
    %323 = vector.multi_reduction <maximumf>, %321, %cst_133 [1] : vector<2x5xf32> to vector<2xf32>
    %324 = vector.shape_cast %323 : vector<2xf32> to vector<2x1xf32>
    %325 = vector.broadcast %324 : vector<2x1xf32> to vector<2x5xf32>
    %326 = arith.subf %321, %325 : vector<2x5xf32>
    %327 = math.exp %326 : vector<2x5xf32>
    %cst_134 = arith.constant dense<0.000000e+00> : vector<2xf32>
    %328 = vector.multi_reduction <add>, %327, %cst_134 [1] : vector<2x5xf32> to vector<2xf32>
    %329 = vector.shape_cast %328 : vector<2xf32> to vector<2x1xf32>
    %330 = vector.broadcast %329 : vector<2x1xf32> to vector<2x5xf32>
    %331 = arith.divf %327, %330 : vector<2x5xf32>
    %c0_135 = arith.constant 0 : index
    %c0_136 = arith.constant 0 : index
    %332 = vector.load %arg21[%c0_135, %c0_136] : memref<2x5xf32, #tpu.memory_space<vmem>>, vector<2x5xf32>
    tpu.vector_store %arg21[%c0_135, %c0_136], %331 {strides = array<i32>} : memref<2x5xf32, #tpu.memory_space<vmem>>, vector<2x5xf32>,
    return
  }
}

</mosaic_0001>

<bundles_post_ra>
// kernel: tpu_custom_call.1
= control target key start
LH: loop header
LB: loop body
LE: loop exit
PB: predicated region body
PF: predicated region fallthrough
CT: control target
= control target key end

     0   :  { %s3463_s0 = inlined_call_operand.hbm [shape: f32[16,32], index: 0, kind: input, shape index: {}]   ;;  %s3464_s1 = inlined_call_operand.hbm [shape: f32[2,1,8], index: 1, kind: input, shape index: {}]   ;;  %s3465_s2 = inlined_call_operand.hbm [shape: f32[1,32], index: 2, kind: input, shape index: {}]   ;;  %s3466_s3 = inlined_call_operand.hbm [shape: f32[1,32], index: 3, kind: input, shape index: {}]   ;;  %s3467_s4 = inlined_call_operand.vmem [shape: bf16[2,32,96], index: 4, kind: input, shape index: {}]   ;;  %s3468_s5 = inlined_call_operand.hbm [shape: f32[2,96], index: 5, kind: input, shape index: {}]   ;;  %s3469_s6 = inlined_call_operand.vmem [shape: bf16[2,32,32], index: 6, kind: input, shape index: {}]   ;;  %s3470_s7 = inlined_call_operand.hbm [shape: f32[2,32], index: 7, kind: input, shape index: {}]   ;;  %s3471_s8 = inlined_call_operand.hbm [shape: f32[2,32], index: 8, kind: input, shape index: {}]   ;;  %s3472_s9 = inlined_call_operand.hbm [shape: f32[2,32], index: 9, kind: input, shape index: {}]   ;;  %s3473_s10 = inlined_call_operand.vmem [shape: bf16[2,32,64], index: 10, kind: input, shape index: {}]   ;;  %s3474_s11 = inlined_call_operand.hbm [shape: f32[2,64], index: 11, kind: input, shape index: {}]   ;;  %s3475_s12 = inlined_call_operand.vmem [shape: bf16[2,64,32], index: 12, kind: input, shape index: {}]   ;;  %s3476_s13 = inlined_call_operand.hbm [shape: f32[2,32], index: 13, kind: input, shape index: {}]   ;;  %s3477_s14 = inlined_call_operand.hbm [shape: f32[2,32], index: 14, kind: input, shape index: {}]   ;;  %s3478_s15 = inlined_call_operand.hbm [shape: f32[2,32], index: 15, kind: input, shape index: {}]   ;;  %s3479_s16 = inlined_call_operand.vmem [shape: bf16[32,32], index: 16, kind: input, shape index: {}]   ;;  %s3480_s17 = inlined_call_operand.hbm [shape: f32[1,32], index: 17, kind: input, shape index: {}]   ;;  %s3481_s18 = inlined_call_operand.vmem [shape: bf16[32,5], index: 18, kind: input, shape index: {}]   ;;  %s3482_s19 = inlined_call_operand.vmem [shape: f32[1,5], index: 19, kind: input, shape index: {}]   ;;  %s3483_s20 = inlined_call_operand.hbm [shape: f32[2,5], index: 20, kind: output, shape index: {0}]   ;;  %s3484_s21 = inlined_call_operand.hbm [shape: f32[2,5], index: 21, kind: output, shape index: {1}]  }
   0x1   :  { %3486 = sst [smem:[#allocation35_spill]] %s3463_s0 }
   0x2   :  { %3487 = sst [smem:[#allocation36_spill]] %s3464_s1 }
   0x3   :  { %3488 = sst [smem:[#allocation37_spill]] %s3465_s2 }
   0x4   :  { %3489 = sst [smem:[#allocation38_spill]] %s3466_s3 }
   0x5   :  { %3490 = sst [smem:[#allocation39_spill]] %s3467_s4 }
   0x6   :  { %3491 = sst [smem:[#allocation40_spill]] %s3468_s5 }
   0x7   :  { %27 = vsyncpa [#allocation3], 0 }
   0x8   :  { %28 = vsyncpa [#allocation6], 0 }
   0x9   :  { %29 = vsyncpa [#allocation9], 0 }
   0xa   :  { %30 = vsyncpa [#allocation12], 0 }
   0xb   :  { %31 = vsyncpa [#allocation15], 0 }
   0xc   :  { %32 = vsyncpa [#allocation18], 0 }
   0xd   :  { %33 = vsyncpa [#allocation21], 0 }
   0xe   :  { %34 = vsyncpa [#allocation4], 0 }
   0xf   :  { %35 = vsyncpa [#allocation25], 0  ;;  %s2933_s2 = smov [#allocation5]  }
  0x10   :  { %s53_s25 = sshll.u32 %s2933_s2, 4  ;;  %s54_s25 = int_to_ptr.vmem [resolvable:$true] %s53_s25 }
  0x11   :  { %s2623_s26 = scalar_lea.vmem %s54_s25, 32  ;;  %p2628_p1 = scmp.lt.s32.totalorder %s54_s25, %s54_s25 }
  0x12   :  { %p2624_p0 = scmp.ne.s32.totalorder %s54_s25, %s2623_s26  ;;  %p2629_p2 = scmp.lt.s32.totalorder %s2623_s26, %s2623_s26 }
  0x14   :  { %p2630_p3 = por %p2629_p2, %p2628_p1 }
  0x16   :  { %p2631_p4 = pnand %p2630_p3, %p2624_p0 }
  0x18   :  { %2634 = shalt.err (!%p2631_p4)
}
  0x19   :  { %s2934_s27 = smov 16   ;;  %s2935_s3 = smov 1  }
  0x1a   :  { %s3492_s0 = sld [smem:[#allocation36_spill]]  ;;  %s2936_s4 = smov [#allocation8]  }
  0x1b   :  { %s76_s30 = sshll.u32 %s2936_s4, 4  ;;  %s2937_s5 = smov [#allocation11]   ;;  %s77_s30 = int_to_ptr.vmem [resolvable:$true] %s76_s30 }
  0x1c   :  { %s100_s22 = sshll.u32 %s2937_s5, 4  ;;  %s2643_s23 = scalar_lea.vmem %s77_s30, 16  ;;  %s101_s22 = int_to_ptr.vmem [resolvable:$true] %s100_s22 }
  0x1d   :  { %p2644_p5 = scmp.ne.s32.totalorder %s77_s30, %s2643_s23  ;;  %s2647_s1 = scalar_lea.vmem %s77_s30, 32 }
  0x1e   :  { %p2648_p6 = scmp.lt.s32.totalorder %s77_s30, %s77_s30  ;;  %p2649_p7 = scmp.lt.s32.totalorder %s2647_s1, %s2643_s23 }
  0x20   :  { %59 = dma.hbm_to_vmem [thread:$0]  %s3492_s0, 32, %s54_s25, [#allocation6], %s2934_s27, %s2934_s27, %s2935_s3  }
  0x21   :  { %p2650_p8 = por %p2649_p7, %p2648_p6 }
  0x23   :  { %p2651_p9 = pnand %p2650_p8, %p2644_p5 }
  0x25   :  { %2654 = shalt.err (!%p2651_p9)
}
  0x26   :  { %s3493_s26 = sld [smem:[#allocation38_spill]]  ;;  %s2663_s28 = scalar_lea.vmem %s101_s22, 32 }
  0x27   :  { %p2664_p10 = scmp.ne.s32.totalorder %s101_s22, %s2663_s28  ;;  %p2668_p11 = scmp.lt.s32.totalorder %s101_s22, %s101_s22 }
  0x28   :  { %p2669_p12 = scmp.lt.s32.totalorder %s2663_s28, %s2663_s28 }
  0x2a   :  { %p2670_p13 = por %p2669_p12, %p2668_p11 }
  0x2c   :  { %79 = dma.hbm_to_vmem [thread:$0]  %s3493_s26, 16, %s77_s30, [#allocation9]  }
  0x2d   :  { %p2671_p0 = pnand %p2670_p13, %p2664_p10 }
  0x2f   :  { %2674 = shalt.err (!%p2671_p0)
}
  0x30   :  { %103 = dma.hbm_to_vmem [thread:$0]  %s3470_s7, 32, %s101_s22, [#allocation12]  }
  0x31   :  { %s2938_s29 = smov [#allocation14]   ;;  %s2939_s4 = smov [#allocation17]  }
  0x32   :  { %s120_s0 = sshll.u32 %s2938_s29, 4  ;;  %s144_s5 = sshll.u32 %s2939_s4, 4  ;;  %s121_s0 = int_to_ptr.vmem [resolvable:$true] %s120_s0  ;;  %s145_s5 = int_to_ptr.vmem [resolvable:$true] %s144_s5 }
  0x33   :  { %s2683_s23 = scalar_lea.vmem %s121_s0, 32  ;;  %p2688_p2 = scmp.lt.s32.totalorder %s121_s0, %s121_s0 }
  0x34   :  { %p2684_p1 = scmp.ne.s32.totalorder %s121_s0, %s2683_s23  ;;  %p2689_p3 = scmp.lt.s32.totalorder %s2683_s23, %s2683_s23 }
  0x36   :  { %p2690_p4 = por %p2689_p3, %p2688_p2 }
  0x38   :  { %p2691_p5 = pnand %p2690_p4, %p2684_p1 }
  0x3a   :  { %2694 = shalt.err (!%p2691_p5)
}
  0x3b   :  { %123 = dma.hbm_to_vmem [thread:$0]  %s3472_s9, 32, %s121_s0, [#allocation15]  }
  0x3c   :  { %s2703_s24 = scalar_lea.vmem %s145_s5, 32  ;;  %p2708_p7 = scmp.lt.s32.totalorder %s145_s5, %s145_s5 }
  0x3d   :  { %p2704_p6 = scmp.ne.s32.totalorder %s145_s5, %s2703_s24  ;;  %p2709_p8 = scmp.lt.s32.totalorder %s2703_s24, %s2703_s24 }
  0x3f   :  { %p2710_p9 = por %p2709_p8, %p2708_p7 }
  0x41   :  { %p2711_p10 = pnand %p2710_p9, %p2704_p6 }
  0x43   :  { %2714 = shalt.err (!%p2711_p10)
}
  0x44   :  { %147 = dma.hbm_to_vmem [thread:$0]  %s3476_s13, 32, %s145_s5, [#allocation18]  }
  0x45   :  { %s2940_s2 = smov [#allocation20]   ;;  %s2941_s28 = smov [#allocation2]  }
  0x46   :  { %s164_s26 = sshll.u32 %s2940_s2, 4  ;;  %s41_s25 = sshll.u32 %s2941_s28, 4  ;;  %s165_s26 = int_to_ptr.vmem [resolvable:$true] %s164_s26  ;;  %s42_s25 = int_to_ptr.vmem [resolvable:$true] %s41_s25 }
  0x47   :  { %s2723_s3 = scalar_lea.vmem %s165_s26, 32  ;;  %p2728_p12 = scmp.lt.s32.totalorder %s165_s26, %s165_s26 }
  0x48   :  { %p2724_p11 = scmp.ne.s32.totalorder %s165_s26, %s2723_s3  ;;  %p2729_p13 = scmp.lt.s32.totalorder %s2723_s3, %s2723_s3 }
  0x4a   :  { %p2730_p0 = por %p2729_p13, %p2728_p12 }
  0x4c   :  { %p2731_p1 = pnand %p2730_p0, %p2724_p11 }
  0x4e   :  { %2734 = shalt.err (!%p2731_p1)
}
  0x4f   :  { %167 = dma.hbm_to_vmem [thread:$0]  %s3478_s15, 32, %s165_s26, [#allocation21]  }
  0x50   :  { %s2743_s0 = scalar_lea.vmem %s42_s25, 256  ;;  %p2748_p3 = scmp.lt.s32.totalorder %s42_s25, %s42_s25 }
  0x51   :  { %p2744_p2 = scmp.ne.s32.totalorder %s42_s25, %s2743_s0  ;;  %p2749_p4 = scmp.lt.s32.totalorder %s2743_s0, %s2743_s0 }
  0x53   :  { %p2750_p5 = por %p2749_p4, %p2748_p3 }
  0x55   :  { %p2751_p6 = pnand %p2750_p5, %p2744_p2 }
  0x57   :  { %2754 = shalt.err (!%p2751_p6)
}
  0x58   :  { %s2942_s13 = smov 128   ;;  %s2943_s4 = smov 8  }
  0x59   :  { %s3494_s30 = sld [smem:[#allocation35_spill]]  ;;  %s2944_s1 = smov [#allocation7]  }
  0x5a   :  { %s66_s24 = sshll.u32 %s2944_s1, 4  ;;  %s2945_s7 = smov [#allocation10]   ;;  %s67_s24 = int_to_ptr.vmem [resolvable:$true] %s66_s24 }
  0x5b   :  { %s88_s22 = sshll.u32 %s2945_s7, 4  ;;  %s2763_s15 = scalar_lea.vmem %s67_s24, 16  ;;  %s89_s22 = int_to_ptr.vmem [resolvable:$true] %s88_s22 }
  0x5c   :  { %p2764_p7 = scmp.ne.s32.totalorder %s67_s24, %s2763_s15  ;;  %s2767_s2 = scalar_lea.vmem %s67_s24, 32 }
  0x5d   :  { %p2768_p8 = scmp.lt.s32.totalorder %s67_s24, %s67_s24  ;;  %p2769_p9 = scmp.lt.s32.totalorder %s2767_s2, %s2763_s15 }
  0x5f   :  { %47 = dma.hbm_to_vmem [thread:$0]  %s3494_s30, 256, %s42_s25, [#allocation3], %s2942_s13, %s2942_s13, %s2943_s4  }
  0x60   :  { %p2770_p10 = por %p2769_p9, %p2768_p8 }
  0x62   :  { %p2771_p11 = pnand %p2770_p10, %p2764_p7 }
  0x64   :  { %2774 = shalt.err (!%p2771_p11)
}
  0x65   :  { %s3495_s3 = sld [smem:[#allocation37_spill]]  ;;  %s2783_s9 = scalar_lea.vmem %s89_s22, 32 }
  0x66   :  { %p2784_p12 = scmp.ne.s32.totalorder %s89_s22, %s2783_s9  ;;  %p2788_p13 = scmp.lt.s32.totalorder %s89_s22, %s89_s22 }
  0x67   :  { %p2789_p0 = scmp.lt.s32.totalorder %s2783_s9, %s2783_s9 }
  0x69   :  { %p2790_p1 = por %p2789_p0, %p2788_p13 }
  0x6b   :  { %69 = dma.hbm_to_vmem [thread:$0]  %s3495_s3, 16, %s67_s24, [#allocation6]  }
  0x6c   :  { %p2791_p2 = pnand %p2790_p1, %p2784_p12 }
  0x6e   :  { %2794 = shalt.err (!%p2791_p2)
}
  0x6f   :  { %s3496_s0 = sld [smem:[#allocation40_spill]]  ;;  %s2946_s13 = smov [#allocation13]  }
  0x70   :  { %s110_s4 = sshll.u32 %s2946_s13, 4  ;;  %s2947_s5 = smov [#allocation16]   ;;  %s111_s4 = int_to_ptr.vmem [resolvable:$true] %s110_s4 }
  0x71   :  { %s132_s23 = sshll.u32 %s2947_s5, 4  ;;  %s2803_s30 = scalar_lea.vmem %s111_s4, 32  ;;  %s133_s23 = int_to_ptr.vmem [resolvable:$true] %s132_s23 }
  0x72   :  { %p2804_p3 = scmp.ne.s32.totalorder %s111_s4, %s2803_s30  ;;  %p2808_p4 = scmp.lt.s32.totalorder %s111_s4, %s111_s4 }
  0x73   :  { %p2809_p5 = scmp.lt.s32.totalorder %s2803_s30, %s2803_s30 }
  0x75   :  { %91 = dma.hbm_to_vmem [thread:$0]  %s3496_s0, 32, %s89_s22, [#allocation9]  }
  0x76   :  { %p2810_p6 = por %p2809_p5, %p2808_p4 }
  0x78   :  { %p2811_p7 = pnand %p2810_p6, %p2804_p3 }
  0x7a   :  { %2814 = shalt.err (!%p2811_p7)
}
  0x7b   :  { %113 = dma.hbm_to_vmem [thread:$0]  %s3471_s8, 32, %s111_s4, [#allocation12]  }
  0x7c   :  { %s2823_s7 = scalar_lea.vmem %s133_s23, 32  ;;  %p2828_p9 = scmp.lt.s32.totalorder %s133_s23, %s133_s23 }
  0x7d   :  { %p2824_p8 = scmp.ne.s32.totalorder %s133_s23, %s2823_s7  ;;  %p2829_p10 = scmp.lt.s32.totalorder %s2823_s7, %s2823_s7 }
  0x7f   :  { %p2830_p11 = por %p2829_p10, %p2828_p9 }
  0x81   :  { %p2831_p12 = pnand %p2830_p11, %p2824_p8 }
  0x83   :  { %2834 = shalt.err (!%p2831_p12)
}
  0x84   :  { %135 = dma.hbm_to_vmem [thread:$0]  %s3474_s11, 32, %s133_s23, [#allocation15]  }
  0x85   :  { %s2948_s2 = smov [#allocation19]   ;;  %s2949_s28 = smov [#allocation22]  }
  0x86   :  { %s154_s26 = sshll.u32 %s2948_s2, 4  ;;  %s176_s3 = sshll.u32 %s2949_s28, 4  ;;  %s155_s26 = int_to_ptr.vmem [resolvable:$true] %s154_s26  ;;  %s177_s3 = int_to_ptr.vmem [resolvable:$true] %s176_s3 }
  0x87   :  { %s2843_s9 = scalar_lea.vmem %s155_s26, 32  ;;  %p2848_p0 = scmp.lt.s32.totalorder %s155_s26, %s155_s26 }
  0x88   :  { %p2844_p13 = scmp.ne.s32.totalorder %s155_s26, %s2843_s9  ;;  %p2849_p1 = scmp.lt.s32.totalorder %s2843_s9, %s2843_s9 }
  0x8a   :  { %p2850_p2 = por %p2849_p1, %p2848_p0 }
  0x8c   :  { %p2851_p3 = pnand %p2850_p2, %p2844_p13 }
  0x8e   :  { %2854 = shalt.err (!%p2851_p3)
}
  0x8f   :  { %157 = dma.hbm_to_vmem [thread:$0]  %s3477_s14, 32, %s155_s26, [#allocation18]  }
  0x90   :  { %s2863_s29 = scalar_lea.vmem %s177_s3, 16  ;;  %s2867_s11 = scalar_lea.vmem %s177_s3, 32 }
  0x91   :  { %p2864_p4 = scmp.ne.s32.totalorder %s177_s3, %s2863_s29  ;;  %p2868_p5 = scmp.lt.s32.totalorder %s177_s3, %s177_s3 }
  0x92   :  { %p2869_p6 = scmp.lt.s32.totalorder %s2867_s11, %s2863_s29 }
  0x94   :  { %p2870_p7 = por %p2869_p6, %p2868_p5 }
  0x96   :  { %p2871_p8 = pnand %p2870_p7, %p2864_p4 }
  0x98   :  { %2874 = shalt.err (!%p2871_p8)
}
  0x99   :  { %179 = dma.hbm_to_vmem [thread:$0]  %s3480_s17, 16, %s177_s3, [#allocation21]  }
  0x9a   :  { %2915 = dma.done.wait [#allocation3], 256  }
  0x9b   :  { %2916 = vsyncadd [#allocation3], 4294967040 }
  0x9c   :  { %2917 = dma.done.wait [#allocation6], 48  }
  0x9d   :  { %2918 = vsyncadd [#allocation6], 4294967248 }
  0x9e   :  { %2919 = dma.done.wait [#allocation9], 48  }
  0x9f   :  { %2920 = vsyncadd [#allocation9], 4294967248 }
  0xa0   :  { %2921 = dma.done.wait [#allocation12], 64  }
  0xa1   :  { %2922 = vsyncadd [#allocation12], 4294967232 }
  0xa2   :  { %2923 = dma.done.wait [#allocation15], 64  }
  0xa3   :  { %2924 = vsyncadd [#allocation15], 4294967232 }
  0xa4   :  { %2925 = dma.done.wait [#allocation18], 64  }
  0xa5   :  { %2926 = vsyncadd [#allocation18], 4294967232 }
  0xa6   :  { %2927 = dma.done.wait [#allocation21], 48  }
  0xa7   :  { %2928 = vsyncadd [#allocation21], 4294967248  ;;  %vm228_vm0 = vcmask 261120   ;;  %v224_v0 = vld [vmem:[#allocation2] sm:$0xff]  ;;  %v225_v1 = vld [vmem:[#allocation2 + $0x8] sm:$0xff]  ;;  %s3497_s4 = sld [smem:[#allocation39_spill]] }
  0xa8   :  { %v229_v2 = vsel %vm228_vm0, %v224_v0, 0.0  ;;  %v232_v3 = vsel %vm228_vm0, %v225_v1, 0.0  ;;  %v2950_v15 = vmov 0.0   ;;  %vm2951_vm1 = vmmov 0   ;;  %v2147_v25 = vld [vmem:[#allocation7] ss:$0 sm:$0xff] }
  0xa9   :  { %230 = vadd.xlane.f32.xlu0 %v229_v2  ;;  %2305 = vmatprep.subr.bf16.mxu0 %v2950_v15  ;;  %v2148_v29 = vld [vmem:[#allocation8] ss:$0 sm:$0xff]  ;;  %v2149_v34 = vld [vmem:[#allocation10] ss:$0 sm:$0xff]  ;;  %s2952_s30 = smov 96   ;;  %vm345_vm2 = vcmask 130048  }
  0xaa   :  { %2309 = vmatprep.mubr.msk.bf16.mxu0 %vm2951_vm1, %v2950_v15  ;;  %2313 = vmatprep.subr.bf16.mxu1 %v2950_v15  ;;  %v3157_v48 = vld [vmem:[#allocation5] ss:$0 sm:$0xff]  ;;  %vm457_vm3 = vcmask 64512   ;;  %v3160_v54 = vld [vmem:[#allocation5 + $0x1] ss:$0 sm:$0xff]  ;;  %s2953_s1 = smov 64  }
  0xab   :  { %2315 = vmatprep.mubr.msk.bf16.mxu1 %vm2951_vm1, %v2950_v15  ;;  %s2954_s24 = smov 80   ;;  %vm487_vm4 = vcmask 1043456   ;;  %s2955_s7 = smov 112   ;;  %vm1035_vm5 = vcmask 523264   ;;  %vm1961_vm6 = vcmask 1040384   ;;  %vm2098_vm7 = vcmask 33792  }
  0xac   :  { %s2956_s22 = smov 48  }
  0xad   :  { %233 = vadd.xlane.f32.xlu0 %v232_v3  ;;  %v2525_v14 = vld [vmem:[%s3497_s4 + $0x8] sm:$0xff]   ;;  %v2526_v16 = vld [vmem:[%s3497_s4] sm:$0xff]  }
  0xae   :  { %2306 = vmatpush3.bf16.msra.mxu0 %v2525_v14 }
  0xaf   :  { %2307 = vmatprep.subr.bf16.mxu0 %v2950_v15 }
  0xb2   :  { %2308 = vmatpush3.bf16.msra.mxu0 %v2526_v16 }
  0xb3   :  { %2319 = vmatprep.subr.bf16.mxu0 %v2950_v15 }
 0x132   :  { %v231_v4 = vpop.xlane.xlu0 %230 }
 0x133   :  { %v236_v5 = vmul.f32 0.03125, %v231_v4 }
 0x135   :  { %v238_v6 = vsub.f32 %v224_v0, %v236_v5 }
 0x136   :  { %v234_v7 = vpop.xlane.xlu0 %233 }
 0x137   :  { %v237_v8 = vmul.f32 0.03125, %v234_v7  ;;  %v240_v9 = vmul.f32 %v238_v6, %v238_v6 }
 0x139   :  { %v239_v10 = vsub.f32 %v225_v1, %v237_v8  ;;  %v242_v11 = vsel %vm228_vm0, %v240_v9, 0.0 }
 0x13a   :  { %243 = vadd.xlane.f32.xlu1 %v242_v11 }
 0x13b   :  { %v241_v12 = vmul.f32 %v239_v10, %v239_v10 }
 0x13d   :  { %v245_v13 = vsel %vm228_vm0, %v241_v12, 0.0 }
 0x13e   :  { %246 = vadd.xlane.f32.xlu1 %v245_v13 }
 0x1c3   :  { %v244_v17 = vpop.xlane.xlu1 %243 }
 0x1c4   :  { %v248_v18 = vmul.f32 0.03125, %v244_v17 }
 0x1c6   :  { %v250_v19 = vadd.f32 1e-05, %v248_v18 }
 0x1c7   :  { %v247_v20 = vpop.xlane.xlu1 %246 }
 0x1c8   :  { %2549 = vrsqrt.f32 %v250_v19  ;;  %v249_v21 = vmul.f32 0.03125, %v247_v20 }
 0x1ca   :  { %v251_v22 = vadd.f32 1e-05, %v249_v21 }
 0x1cc   :  { %2551 = vrsqrt.f32 %v251_v22 }
 0x1d5   :  { %v2550_v23 = vpop.eup %2549 }
 0x1d6   :  { %v254_v24 = vmul.f32 %v2550_v23, %v238_v6 }
 0x1d8   :  { %v262_v28 = vmul.f32 %v2147_v25, %v254_v24 }
 0x1d9   :  { %v2552_v26 = vpop.eup %2551 }
 0x1da   :  { %v255_v27 = vmul.f32 %v2552_v26, %v239_v10  ;;  %v3128_v31 = vadd.f32 %v2148_v29, %v262_v28 }
 0x1dc   :  { %v263_v30 = vmul.f32 %v2147_v25, %v255_v27 }
 0x1de   :  { %v3130_v32 = vadd.f32 %v2148_v29, %v263_v30 }
 0x1e0   :  { %v278_v33 = vpack.c.bf16 %v3130_v32, %v3128_v31 }
 0x1e2   :  { %2310 = vmatmul.mubr.msk.bf16.vlgmr.msra.gmra.mxu0 %vm228_vm0, %v278_v33 }
 0x1e3   :  { %2321 = vmatprep.mubr.msk.bf16.mxu0 %vm2951_vm1, %v2950_v15 }
 0x2a2   :  { %v333_v35 = vpop.f32.mrf.mxu0 }
 0x2a3   :  { %v334_v36 = vadd.f32 %v2149_v34, %v333_v35 }
 0x2a4   :  { %v2311_v37 = vpop.f32.mrf.mxu0 }
 0x2a5   :  { %v3137_v38 = vpack.c.bf16 %v334_v36, %v334_v36 }
 0x2a6   :  { %v336_v39 = vpop.f32.mrf.mxu0 }
 0x2a7   :  { %v337_v40 = vadd.f32 %v2149_v34, %v336_v39  ;;  %343 = vrot.lane.b32.xlu0 %v3137_v38, %s2952_s30 }
 0x2a8   :  { %v2312_v41 = vpop.f32.mrf.mxu0 }
 0x2a9   :  { %v3141_v42 = vpack.c.bf16 %v337_v40, %v337_v40 }
 0x2ab   :  { %393 = vrot.lane.b32.xlu1 %v3141_v42, %s2952_s30 }
 0x319   :  { %v344_v43 = vpop.permute.xlu0 %343 }
 0x31a   :  { %v350_v44 = vsel %vm345_vm2, %v344_v43, 0 }
 0x31b   :  { %2314 = vmatpush3.bf16.xpose.msra.mxu1 %v350_v44 }
 0x31c   :  { %2325 = vmatprep.subr.bf16.mxu1 %v2950_v15 }
 0x31d   :  { %v394_v45 = vpop.permute.xlu1 %393 }
 0x31e   :  { %v399_v46 = vsel %vm345_vm2, %v394_v45, 0 }
 0x31f   :  { %2320 = vmatpush3.bf16.xpose.msra.mxu0 %v399_v46 }
 0x320   :  { %2331 = vmatprep.subr.bf16.mxu0 %v2950_v15 }
 0x322   :  { %2316 = vmatmul.mubr.msk.bf16.vlgmr.msra.gmra.mxu1 %vm345_vm2, %v3137_v38 }
 0x323   :  { %2327 = vmatprep.mubr.msk.bf16.mxu1 %vm2951_vm1, %v2950_v15 }
 0x326   :  { %2322 = vmatmul.mubr.msk.bf16.vlgmr.msra.gmra.mxu0 %vm345_vm2, %v3141_v42 }
 0x327   :  { %2333 = vmatprep.mubr.msk.bf16.mxu0 %vm2951_vm1, %v2950_v15 }
 0x3e2   :  { %v386_v47 = vpop.f32.mrf.mxu1 }
 0x3e3   :  { %v441_v49 = vmul.f32 0.25, %v386_v47 }
 0x3e4   :  { %v2317_v50 = vpop.f32.mrf.mxu1 }
 0x3e5   :  { %v455_v51 = vadd.f32 %v3157_v48, %v441_v49 }
 0x3e6   :  { %v389_v52 = vpop.f32.mrf.mxu1  ;;  %v435_v53 = vpop.f32.mrf.mxu0 }
 0x3e7   :  { %v442_v55 = vmul.f32 0.25, %v435_v53  ;;  %v458_v56 = vsel %vm457_vm3, %v455_v51, -inf }
 0x3e8   :  { %v2318_v57 = vpop.f32.mrf.mxu1  ;;  %459 = vmax.xlane.f32.xlu1 %v458_v56  ;;  %v2323_v58 = vpop.f32.mrf.mxu0 }
 0x3e9   :  { %v456_v59 = vadd.f32 %v3160_v54, %v442_v55 }
 0x3ea   :  { %v438_v60 = vpop.f32.mrf.mxu0 }
 0x3eb   :  { %v461_v61 = vsel %vm457_vm3, %v456_v59, -inf }
 0x3ec   :  { %462 = vmax.xlane.f32.xlu0 %v461_v61  ;;  %v2324_v62 = vpop.f32.mrf.mxu0 }
 0x3f9   :  { %531 = vrot.lane.b32.xlu1 %v3141_v42, %s2953_s1 }
 0x3fd   :  { %581 = vrot.lane.b32.xlu1 %v3137_v38, %s2954_s24 }
 0x471   :  { %v460_v63 = vpop.xlane.xlu1 %459 }
 0x472   :  { %v464_v0 = vsub.f32 %v455_v51, %v460_v63 }
 0x474   :  { %v466_v1 = vmul.f32 1.442695, %v464_v0 }
 0x475   :  { %v532_v2 = vpop.permute.xlu1 %531  ;;  %v463_v3 = vpop.xlane.xlu0 %462 }
 0x476   :  { %2553 = vpow2.f32 %v466_v1  ;;  %v537_v4 = vsel %vm487_vm4, %v532_v2, 0  ;;  %v465_v5 = vsub.f32 %v456_v59, %v463_v3 }
 0x477   :  { %2332 = vmatpush3.bf16.msra.mxu0 %v537_v4 }
 0x478   :  { %v468_v6 = vmul.f32 1.442695, %v465_v5  ;;  %2343 = vmatprep.subr.bf16.mxu0 %v2950_v15 }
 0x479   :  { %v582_v11 = vpop.permute.xlu1 %581 }
 0x47a   :  { %2555 = vpow2.f32 %v468_v6  ;;  %v587_v21 = vsel %vm345_vm2, %v582_v11, 0 }
 0x483   :  { %v2554_v7 = vpop.eup %2553 }
 0x484   :  { %v470_v8 = vsel %vm457_vm3, %v2554_v7, 0.0 }
 0x485   :  { %471 = vadd.xlane.f32.xlu0 %v470_v8 }
 0x487   :  { %v2556_v9 = vpop.eup %2555 }
 0x488   :  { %v473_v10 = vsel %vm457_vm3, %v2556_v9, 0.0 }
 0x489   :  { %474 = vadd.xlane.f32.xlu1 %v473_v10 }
 0x49a   :  { %631 = vrot.lane.b32.xlu1 %v3141_v42, %s2954_s24 }
 0x49b   :  { %482 = vrot.lane.b32.xlu0 %v3137_v38, %s2953_s1 }
 0x49e   :  { %629 = vrot.lane.b32.xlu1 %v3141_v42, %s2955_s7 }
 0x49f   :  { %579 = vrot.lane.b32.xlu0 %v3137_v38, %s2955_s7 }
 0x50e   :  { %v472_v12 = vpop.xlane.xlu0 %471 }
 0x50f   :  { %2557 = vrcp.f32 %v472_v12  ;;  %v2527_v12 = vld [vmem:[%s3469_s6 + $0x8] sm:$0xff]  }
 0x512   :  { %v475_v13 = vpop.xlane.xlu1 %474  ;;  %v483_v14 = vpop.permute.xlu0 %482 }
 0x513   :  { %2559 = vrcp.f32 %v475_v13  ;;  %v489_v16 = vsel %vm487_vm4, %v483_v14, 0  ;;  %v2528_v13 = vld [vmem:[%s3469_s6] sm:$0xff]  }
 0x514   :  { %2326 = vmatpush3.bf16.msra.mxu1 %v489_v16 }
 0x515   :  { %2337 = vmatprep.subr.bf16.mxu1 %v2950_v15 }
 0x516   :  { %v632_v23 = vpop.permute.xlu1 %631  ;;  %v580_v26 = vpop.permute.xlu0 %579 }
 0x517   :  { %v637_v25 = vsel %vm345_vm2, %v632_v23, 0 }
 0x51a   :  { %v630_v27 = vpop.permute.xlu1 %629 }
 0x51c   :  { %v2558_v17 = vpop.eup %2557 }
 0x51d   :  { %v478_v18 = vmul.f32 %v2558_v17, %v2554_v7 }
 0x51f   :  { %v480_v19 = vpack.c.bf16 %v478_v18, %v478_v18 }
 0x520   :  { %v2560_v20 = vpop.eup %2559 }
 0x521   :  { %2328 = vmatmul.mubr.msk.bf16.vlgmr.msra.gmra.mxu1 %vm457_vm3, %v480_v19  ;;  %v479_v22 = vmul.f32 %v2560_v20, %v2556_v9 }
 0x522   :  { %2338 = vmatpush3.bf16.xpose.msra.mxu1 %v587_v21  ;;  %2339 = vmatprep.mubr.msk.bf16.mxu1 %vm2951_vm1, %v2950_v15 }
 0x523   :  { %v481_v24 = vpack.c.bf16 %v479_v22, %v479_v22  ;;  %2349 = vmatprep.subr.bf16.mxu1 %v2950_v15 }
 0x525   :  { %2334 = vmatmul.mubr.msk.bf16.vlgmr.msra.gmra.mxu0 %vm457_vm3, %v481_v24 }
 0x526   :  { %2344 = vmatpush3.bf16.xpose.msra.mxu0 %v637_v25  ;;  %2345 = vmatprep.mubr.msk.bf16.mxu0 %vm2951_vm1, %v2950_v15 }
 0x527   :  { %2355 = vmatprep.subr.bf16.mxu0 %v2950_v15 }
 0x529   :  { %2340 = vmatmul.mubr.msk.bf16.vlgmr.msra.gmra.mxu1 %vm345_vm2, %v580_v26 }
 0x52a   :  { %2351 = vmatprep.mubr.msk.bf16.mxu1 %vm2951_vm1, %v2950_v15 }
 0x52d   :  { %2346 = vmatmul.mubr.msk.bf16.vlgmr.msra.gmra.mxu0 %vm345_vm2, %v630_v27 }
 0x52e   :  { %2357 = vmatprep.mubr.msk.bf16.mxu0 %vm2951_vm1, %v2950_v15 }
 0x5e1   :  { %v3199_v28 = vpop.f32.mrf.mxu1 }
 0x5e3   :  { %v2329_v29 = vpop.f32.mrf.mxu1 }
 0x5e5   :  { %v528_v30 = vpop.f32.mrf.mxu1  ;;  %v3201_v33 = vpop.f32.mrf.mxu0 }
 0x5e7   :  { %v2330_v34 = vpop.f32.mrf.mxu1  ;;  %v2335_v35 = vpop.f32.mrf.mxu0 }
 0x5e8   :  { %v2163_v34 = vld [vmem:[#allocation11] ss:$0 sm:$0xff] }
 0x5e9   :  { %v576_v36 = vpop.f32.mrf.mxu0  ;;  %v623_v37 = vpop.f32.mrf.mxu1 }
 0x5ea   :  { %v679_v39 = vmul.f32 0.25, %v623_v37 }
 0x5eb   :  { %v2336_v40 = vpop.f32.mrf.mxu0  ;;  %v2341_v41 = vpop.f32.mrf.mxu1 }
 0x5ec   :  { %v681_v43 = vadd.f32 %v3157_v48, %v679_v39 }
 0x5ed   :  { %v626_v44 = vpop.f32.mrf.mxu1  ;;  %v673_v45 = vpop.f32.mrf.mxu0 }
 0x5ee   :  { %v680_v46 = vmul.f32 0.25, %v673_v45  ;;  %v683_v47 = vsel %vm457_vm3, %v681_v43, -inf }
 0x5ef   :  { %684 = vmax.xlane.f32.xlu0 %v683_v47  ;;  %v2342_v49 = vpop.f32.mrf.mxu1  ;;  %v2347_v50 = vpop.f32.mrf.mxu0 }
 0x5f0   :  { %v682_v51 = vadd.f32 %v3160_v54, %v680_v46 }
 0x5f1   :  { %v676_v52 = vpop.f32.mrf.mxu0 }
 0x5f2   :  { %v686_v53 = vsel %vm457_vm3, %v682_v51, -inf }
 0x5f3   :  { %687 = vmax.xlane.f32.xlu1 %v686_v53  ;;  %v2348_v55 = vpop.f32.mrf.mxu0 }
 0x604   :  { %755 = vrot.lane.b32.xlu1 %v3141_v42, %s2956_s22 }
 0x678   :  { %v685_v56 = vpop.xlane.xlu0 %684 }
 0x679   :  { %v689_v57 = vsub.f32 %v681_v43, %v685_v56  ;;  %v2530_v56 = vld [vmem:[%s3473_s10] sm:$0xff]  }
 0x67b   :  { %v691_v58 = vmul.f32 1.442695, %v689_v57 }
 0x67c   :  { %v688_v59 = vpop.xlane.xlu1 %687 }
 0x67d   :  { %2561 = vpow2.f32 %v691_v58  ;;  %v690_v60 = vsub.f32 %v682_v51, %v688_v59 }
 0x67f   :  { %v693_v61 = vmul.f32 1.442695, %v690_v60 }
 0x680   :  { %v756_v62 = vpop.permute.xlu1 %755 }
 0x681   :  { %2563 = vpow2.f32 %v693_v61  ;;  %v761_v63 = vsel %vm487_vm4, %v756_v62, 0 }
 0x682   :  { %2356 = vmatpush3.bf16.msra.mxu0 %v761_v63 }
 0x683   :  { %2369 = vmatprep.subr.bf16.mxu0 %v2950_v15 }
 0x68a   :  { %v2562_v0 = vpop.eup %2561 }
 0x68b   :  { %v695_v1 = vsel %vm457_vm3, %v2562_v0, 0.0 }
 0x68c   :  { %696 = vadd.xlane.f32.xlu0 %v695_v1  ;;  %v2167_v1 = vld [vmem:[#allocation13] ss:$0 sm:$0xff] }
 0x68e   :  { %v2564_v2 = vpop.eup %2563 }
 0x68f   :  { %v698_v42 = vsel %vm457_vm3, %v2564_v2, 0.0 }
 0x690   :  { %699 = vadd.xlane.f32.xlu0 %v698_v42 }
 0x6a6   :  { %707 = vrot.lane.b32.xlu0 %v3137_v38, %s2956_s22 }
 0x715   :  { %v697_v3 = vpop.xlane.xlu0 %696 }
 0x716   :  { %2565 = vrcp.f32 %v697_v3 }
 0x719   :  { %v700_v4 = vpop.xlane.xlu0 %699 }
 0x71a   :  { %2567 = vrcp.f32 %v700_v4  ;;  %v2168_v4 = vld [vmem:[#allocation14] ss:$0 sm:$0xff] }
 0x71d   :  { %v708_v5 = vpop.permute.xlu0 %707 }
 0x71e   :  { %v713_v6 = vsel %vm487_vm4, %v708_v5, 0 }
 0x71f   :  { %2350 = vmatpush3.bf16.msra.mxu1 %v713_v6 }
 0x720   :  { %2361 = vmatprep.subr.bf16.mxu1 %v2950_v15 }
 0x723   :  { %v2566_v7 = vpop.eup %2565 }
 0x724   :  { %v703_v8 = vmul.f32 %v2566_v7, %v2562_v0 }
 0x726   :  { %v705_v9 = vpack.c.bf16 %v703_v8, %v703_v8 }
 0x727   :  { %v2568_v10 = vpop.eup %2567 }
 0x728   :  { %2352 = vmatmul.mubr.msk.bf16.vlgmr.msra.gmra.mxu1 %vm457_vm3, %v705_v9  ;;  %v704_v11 = vmul.f32 %v2568_v10, %v2564_v2  ;;  %v2531_v9 = vld [vmem:[%s3475_s12 + $0x18] sm:$0xff]   ;;  %v2532_v10 = vld [vmem:[%s3475_s12 + $0x10] sm:$0xff]  }
 0x729   :  { %2365 = vmatprep.mubr.msk.bf16.mxu1 %vm2951_vm1, %v2950_v15  ;;  %2362 = vmatpush3.bf16.msra.mxu1 %v2527_v12  ;;  %v2169_v12 = vld [vmem:[#allocation16] ss:$0 sm:$0xff] }
 0x72a   :  { %v706_v38 = vpack.c.bf16 %v704_v11, %v704_v11  ;;  %2363 = vmatprep.subr.bf16.mxu1 %v2950_v15  ;;  %v2533_v11 = vld [vmem:[%s3475_s12 + $0x8] sm:$0xff]  }
 0x72c   :  { %2358 = vmatmul.mubr.msk.bf16.vlgmr.msra.gmra.mxu0 %vm457_vm3, %v706_v38  ;;  %v2534_v38 = vld [vmem:[%s3475_s12] sm:$0xff]  }
 0x72d   :  { %2373 = vmatprep.mubr.msk.bf16.mxu0 %vm2951_vm1, %v2950_v15  ;;  %2364 = vmatpush3.bf16.msra.mxu1 %v2528_v13 }
 0x72e   :  { %2377 = vmatprep.subr.bf16.mxu1 %v2950_v15 }
 0x7e8   :  { %v749_v14 = vpop.f32.mrf.mxu1 }
 0x7ea   :  { %v2353_v16 = vpop.f32.mrf.mxu1 }
 0x7ec   :  { %v752_v17 = vpop.f32.mrf.mxu1  ;;  %v797_v18 = vpop.f32.mrf.mxu0 }
 0x7ed   :  { %v2515_v19 = vpack.i.bf16 %v797_v18, %v749_v14 }
 0x7ee   :  { %v2354_v20 = vpop.f32.mrf.mxu1  ;;  %v2359_v21 = vpop.f32.mrf.mxu0 }
 0x7ef   :  { %2516 = vrot.lane.b32.xlu1 %v2515_v19, %s2934_s27 }
 0x7f0   :  { %v800_v22 = vpop.f32.mrf.mxu0 }
 0x7f2   :  { %v2360_v23 = vpop.f32.mrf.mxu0 }
 0x861   :  { %v2517_v24 = vpop.permute.xlu1 %2516 }
 0x862   :  { %v2519_v25 = vunpack.i.h.bf16 %v2517_v24  ;;  %v2518_v26 = vunpack.i.l.bf16 %v2517_v24 }
 0x864   :  { %v812_v27 = vsel %vm345_vm2, %v3201_v33, %v2519_v25  ;;  %v811_v29 = vsel %vm345_vm2, %v3199_v28, %v2518_v26 }
 0x865   :  { %v817_v30 = vpack.c.bf16 %v812_v27, %v811_v29 }
 0x867   :  { %2366 = vmatmul.mubr.msk.bf16.vlgmr.msra.gmra.mxu1 %vm228_vm0, %v817_v30 }
 0x868   :  { %2385 = vmatprep.mubr.msk.bf16.mxu1 %vm2951_vm1, %v2950_v15  ;;  %2378 = vmatpush3.bf16.msra.mxu1 %v2531_v9 }
 0x869   :  { %2379 = vmatprep.subr.bf16.mxu1 %v2950_v15 }
 0x86c   :  { %2380 = vmatpush3.bf16.msra.mxu1 %v2532_v10  ;;  %v2185_v10 = vld [vmem:[#allocation10 + $0x1] ss:$0 sm:$0xff] }
 0x86d   :  { %2381 = vmatprep.subr.bf16.mxu1 %v2950_v15 }
 0x870   :  { %2382 = vmatpush3.bf16.msra.mxu1 %v2533_v11 }
 0x871   :  { %2383 = vmatprep.subr.bf16.mxu1 %v2950_v15 }
 0x874   :  { %2384 = vmatpush3.bf16.msra.mxu1 %v2534_v38 }
 0x875   :  { %2403 = vmatprep.subr.bf16.mxu1 %v2950_v15 }
 0x927   :  { %v872_v35 = vpop.f32.mrf.mxu1 }
 0x928   :  { %v873_v36 = vadd.f32 %v2163_v34, %v872_v35  ;;  %v2173_v35 = vld [vmem:[#allocation17] ss:$0 sm:$0xff] }
 0x929   :  { %v2367_v37 = vpop.f32.mrf.mxu1 }
 0x92a   :  { %v879_v39 = vadd.f32 %v873_v36, %v3128_v31 }
 0x92b   :  { %v875_v40 = vpop.f32.mrf.mxu1 }
 0x92c   :  { %v876_v41 = vadd.f32 %v2163_v34, %v875_v40  ;;  %v883_v43 = vsel %vm228_vm0, %v879_v39, 0.0 }
 0x92d   :  { %884 = vadd.xlane.f32.xlu1 %v883_v43  ;;  %v2368_v33 = vpop.f32.mrf.mxu1 }
 0x92e   :  { %v880_v28 = vadd.f32 %v876_v41, %v3130_v32  ;;  %v2529_v32 = vld [vmem:[%s3473_s10 + $0x8] sm:$0xff]  }
 0x92f   :  { %2370 = vmatpush3.bf16.msra.mxu0 %v2529_v32 }
 0x930   :  { %v886_v44 = vsel %vm228_vm0, %v880_v28, 0.0  ;;  %2371 = vmatprep.subr.bf16.mxu0 %v2950_v15 }
 0x931   :  { %887 = vadd.xlane.f32.xlu0 %v886_v44 }
 0x933   :  { %2372 = vmatpush3.bf16.msra.mxu0 %v2530_v56  ;;  %v2535_v56 = vld [vmem:[%s3497_s4 + $0x18] sm:$0xff]  }
 0x934   :  { %2389 = vmatprep.subr.bf16.mxu0 %v2950_v15 }
 0x9b6   :  { %v885_v45 = vpop.xlane.xlu1 %884 }
 0x9b7   :  { %v889_v46 = vmul.f32 0.03125, %v885_v45 }
 0x9b9   :  { %v891_v47 = vsub.f32 %v879_v39, %v889_v46 }
 0x9ba   :  { %v888_v49 = vpop.xlane.xlu0 %887 }
 0x9bb   :  { %v890_v50 = vmul.f32 0.03125, %v888_v49  ;;  %v893_v51 = vmul.f32 %v891_v47, %v891_v47 }
 0x9bd   :  { %v892_v52 = vsub.f32 %v880_v28, %v890_v50  ;;  %v895_v31 = vsel %vm228_vm0, %v893_v51, 0.0 }
 0x9be   :  { %896 = vadd.xlane.f32.xlu0 %v895_v31 }
 0x9bf   :  { %v894_v53 = vmul.f32 %v892_v52, %v892_v52 }
 0x9c1   :  { %v898_v55 = vsel %vm228_vm0, %v894_v53, 0.0 }
 0x9c2   :  { %899 = vadd.xlane.f32.xlu0 %v898_v55 }
 0xa47   :  { %v897_v57 = vpop.xlane.xlu0 %896 }
 0xa48   :  { %v901_v58 = vmul.f32 0.03125, %v897_v57  ;;  %v2536_v57 = vld [vmem:[%s3497_s4 + $0x10] sm:$0xff]  }
 0xa4a   :  { %v903_v59 = vadd.f32 1e-05, %v901_v58 }
 0xa4b   :  { %v900_v60 = vpop.xlane.xlu0 %899 }
 0xa4c   :  { %2569 = vrsqrt.f32 %v903_v59  ;;  %v902_v61 = vmul.f32 0.03125, %v900_v60 }
 0xa4e   :  { %v904_v62 = vadd.f32 1e-05, %v902_v61 }
 0xa50   :  { %2571 = vrsqrt.f32 %v904_v62 }
 0xa59   :  { %v2570_v63 = vpop.eup %2569 }
 0xa5a   :  { %v907_v0 = vmul.f32 %v2570_v63, %v891_v47 }
 0xa5c   :  { %v913_v3 = vmul.f32 %v2167_v1, %v907_v0 }
 0xa5d   :  { %v2572_v2 = vpop.eup %2571 }
 0xa5e   :  { %v908_v42 = vmul.f32 %v2572_v2, %v892_v52  ;;  %v919_v6 = vadd.f32 %v2168_v4, %v913_v3  ;;  %v2179_v2 = vld [vmem:[#allocation19] ss:$0 sm:$0xff] }
 0xa60   :  { %v914_v5 = vmul.f32 %v2167_v1, %v908_v42 }
 0xa62   :  { %v920_v7 = vadd.f32 %v2168_v4, %v914_v5  ;;  %v2180_v5 = vld [vmem:[#allocation20] ss:$0 sm:$0xff] }
 0xa64   :  { %v925_v8 = vpack.c.bf16 %v920_v7, %v919_v6 }
 0xa66   :  { %2374 = vmatmul.mubr.msk.bf16.vlgmr.msra.gmra.mxu0 %vm228_vm0, %v925_v8 }
 0xa67   :  { %2393 = vmatprep.mubr.msk.bf16.mxu0 %vm2951_vm1, %v2950_v15  ;;  %2390 = vmatpush3.bf16.msra.mxu0 %v2535_v56 }
 0xa68   :  { %2391 = vmatprep.subr.bf16.mxu0 %v2950_v15 }
 0xa6b   :  { %2392 = vmatpush3.bf16.msra.mxu0 %v2536_v57 }
 0xa6c   :  { %2397 = vmatprep.subr.bf16.mxu0 %v2950_v15 }
 0xb26   :  { %v980_v13 = vpop.f32.mrf.mxu0 }
 0xb27   :  { %v981_v14 = vadd.f32 %v2169_v12, %v980_v13 }
 0xb28   :  { %v2375_v16 = vpop.f32.mrf.mxu0 }
 0xb29   :  { %v989_v17 = vmul.f32 0.70710677, %v981_v14  ;;  %v987_v25 = vmul.f32 0.5, %v981_v14 }
 0xb2a   :  { %v983_v18 = vpop.f32.mrf.mxu0 }
 0xb2b   :  { %2573 = verf.f32 %v989_v17  ;;  %v984_v19 = vadd.f32 %v2169_v12, %v983_v18 }
 0xb2c   :  { %v2376_v20 = vpop.f32.mrf.mxu0 }
 0xb2d   :  { %v990_v21 = vmul.f32 0.70710677, %v984_v19  ;;  %v988_v26 = vmul.f32 0.5, %v984_v19 }
 0xb2f   :  { %2575 = verf.f32 %v990_v21 }
 0xb38   :  { %v2574_v22 = vpop.eup %2573 }
 0xb39   :  { %v993_v23 = vadd.f32 1.0, %v2574_v22 }
 0xb3b   :  { %v995_v29 = vmul.f32 %v993_v23, %v987_v25 }
 0xb3c   :  { %v2576_v24 = vpop.eup %2575 }
 0xb3d   :  { %v994_v27 = vadd.f32 1.0, %v2576_v24 }
 0xb3f   :  { %v996_v30 = vmul.f32 %v994_v27, %v988_v26 }
 0xb41   :  { %v1005_v34 = vpack.c.bf16 %v996_v30, %v995_v29 }
 0xb43   :  { %2386 = vmatmul.mubr.msk.bf16.vlgmr.msra.gmra.mxu1 %vm1035_vm5, %v1005_v34 }
 0xb44   :  { %2405 = vmatprep.mubr.msk.bf16.mxu1 %vm2951_vm1, %v2950_v15 }
 0xc03   :  { %v1073_v36 = vpop.f32.mrf.mxu1 }
 0xc04   :  { %v1074_v37 = vadd.f32 %v2173_v35, %v1073_v36 }
 0xc05   :  { %v2387_v39 = vpop.f32.mrf.mxu1 }
 0xc06   :  { %v1080_v40 = vadd.f32 %v1074_v37, %v919_v6 }
 0xc07   :  { %v1076_v41 = vpop.f32.mrf.mxu1 }
 0xc08   :  { %v1077_v43 = vadd.f32 %v2173_v35, %v1076_v41  ;;  %v1084_v33 = vsel %vm228_vm0, %v1080_v40, 0.0 }
 0xc09   :  { %1085 = vadd.xlane.f32.xlu1 %v1084_v33  ;;  %v2388_v28 = vpop.f32.mrf.mxu1 }
 0xc0a   :  { %v1081_v44 = vadd.f32 %v1077_v43, %v920_v7 }
 0xc0c   :  { %v1087_v45 = vsel %vm228_vm0, %v1081_v44, 0.0 }
 0xc0d   :  { %1088 = vadd.xlane.f32.xlu0 %v1087_v45 }
 0xc92   :  { %v1086_v46 = vpop.xlane.xlu1 %1085 }
 0xc93   :  { %v1090_v47 = vmul.f32 0.03125, %v1086_v46 }
 0xc95   :  { %v1092_v49 = vsub.f32 %v1080_v40, %v1090_v47 }
 0xc96   :  { %v1089_v50 = vpop.xlane.xlu0 %1088 }
 0xc97   :  { %v1091_v51 = vmul.f32 0.03125, %v1089_v50  ;;  %v1094_v52 = vmul.f32 %v1092_v49, %v1092_v49 }
 0xc99   :  { %v1093_v31 = vsub.f32 %v1081_v44, %v1091_v51  ;;  %v1096_v53 = vsel %vm228_vm0, %v1094_v52, 0.0 }
 0xc9a   :  { %1097 = vadd.xlane.f32.xlu1 %v1096_v53 }
 0xc9b   :  { %v1095_v55 = vmul.f32 %v1093_v31, %v1093_v31 }
 0xc9d   :  { %v1099_v32 = vsel %vm228_vm0, %v1095_v55, 0.0 }
 0xc9e   :  { %1100 = vadd.xlane.f32.xlu0 %v1099_v32 }
 0xd23   :  { %v1098_v58 = vpop.xlane.xlu1 %1097 }
 0xd24   :  { %v1102_v59 = vmul.f32 0.03125, %v1098_v58 }
 0xd26   :  { %v1104_v60 = vadd.f32 1e-05, %v1102_v59 }
 0xd27   :  { %v1101_v61 = vpop.xlane.xlu0 %1100 }
 0xd28   :  { %2577 = vrsqrt.f32 %v1104_v60  ;;  %v1103_v62 = vmul.f32 0.03125, %v1101_v61 }
 0xd2a   :  { %v1105_v63 = vadd.f32 1e-05, %v1103_v62 }
 0xd2c   :  { %2579 = vrsqrt.f32 %v1105_v63 }
 0xd35   :  { %v2578_v0 = vpop.eup %2577 }
 0xd36   :  { %v1108_v1 = vmul.f32 %v2578_v0, %v1092_v49 }
 0xd38   :  { %v1114_v4 = vmul.f32 %v2179_v2, %v1108_v1 }
 0xd39   :  { %v2580_v42 = vpop.eup %2579 }
 0xd3a   :  { %v1109_v3 = vmul.f32 %v2580_v42, %v1093_v31  ;;  %v3287_v7 = vadd.f32 %v2180_v5, %v1114_v4 }
 0xd3c   :  { %v1115_v6 = vmul.f32 %v2179_v2, %v1109_v3 }
 0xd3e   :  { %v3289_v8 = vadd.f32 %v2180_v5, %v1115_v6 }
 0xd40   :  { %v1127_v9 = vpack.c.bf16 %v3289_v8, %v3287_v7 }
 0xd42   :  { %2394 = vmatmul.mubr.msk.bf16.vlgmr.msra.gmra.mxu0 %vm228_vm0, %v1127_v9 }
 0xd43   :  { %2399 = vmatprep.mubr.msk.bf16.mxu0 %vm2951_vm1, %v2950_v15 }
 0xe02   :  { %v1182_v11 = vpop.f32.mrf.mxu0 }
 0xe03   :  { %v1183_v38 = vadd.f32 %v2185_v10, %v1182_v11 }
 0xe04   :  { %v2395_v12 = vpop.f32.mrf.mxu0 }
 0xe05   :  { %v3296_v13 = vpack.c.bf16 %v1183_v38, %v1183_v38 }
 0xe06   :  { %v1185_v14 = vpop.f32.mrf.mxu0 }
 0xe07   :  { %v1186_v16 = vadd.f32 %v2185_v10, %v1185_v14  ;;  %1192 = vrot.lane.b32.xlu1 %v3296_v13, %s2952_s30 }
 0xe08   :  { %v2396_v17 = vpop.f32.mrf.mxu0 }
 0xe09   :  { %v3300_v18 = vpack.c.bf16 %v1186_v16, %v1186_v16 }
 0xe0b   :  { %1241 = vrot.lane.b32.xlu0 %v3300_v18, %s2952_s30 }
 0xe79   :  { %v1193_v19 = vpop.permute.xlu1 %1192 }
 0xe7a   :  { %v1198_v20 = vsel %vm345_vm2, %v1193_v19, 0 }
 0xe7b   :  { %2398 = vmatpush3.bf16.xpose.msra.mxu0 %v1198_v20 }
 0xe7c   :  { %2409 = vmatprep.subr.bf16.mxu0 %v2950_v15 }
 0xe7d   :  { %v1242_v21 = vpop.permute.xlu0 %1241 }
 0xe7e   :  { %v1247_v22 = vsel %vm345_vm2, %v1242_v21, 0 }
 0xe7f   :  { %2404 = vmatpush3.bf16.xpose.msra.mxu1 %v1247_v22 }
 0xe80   :  { %2415 = vmatprep.subr.bf16.mxu1 %v2950_v15 }
 0xe82   :  { %2400 = vmatmul.mubr.msk.bf16.vlgmr.msra.gmra.mxu0 %vm345_vm2, %v3296_v13 }
 0xe83   :  { %2411 = vmatprep.mubr.msk.bf16.mxu0 %vm2951_vm1, %v2950_v15 }
 0xe86   :  { %2406 = vmatmul.mubr.msk.bf16.vlgmr.msra.gmra.mxu1 %vm345_vm2, %v3300_v18 }
 0xe87   :  { %2417 = vmatprep.mubr.msk.bf16.mxu1 %vm2951_vm1, %v2950_v15 }
 0xf42   :  { %v1234_v23 = vpop.f32.mrf.mxu0 }
 0xf43   :  { %v1289_v24 = vmul.f32 0.25, %v1234_v23 }
 0xf44   :  { %v2401_v25 = vpop.f32.mrf.mxu0 }
 0xf45   :  { %v1291_v26 = vadd.f32 %v3157_v48, %v1289_v24 }
 0xf46   :  { %v1237_v27 = vpop.f32.mrf.mxu0  ;;  %v1283_v29 = vpop.f32.mrf.mxu1 }
 0xf47   :  { %v1290_v30 = vmul.f32 0.25, %v1283_v29  ;;  %v1293_v34 = vsel %vm457_vm3, %v1291_v26, -inf }
 0xf48   :  { %v2407_v35 = vpop.f32.mrf.mxu1  ;;  %1294 = vmax.xlane.f32.xlu1 %v1293_v34  ;;  %v2402_v36 = vpop.f32.mrf.mxu0 }
 0xf49   :  { %v1292_v37 = vadd.f32 %v3160_v54, %v1290_v30 }
 0xf4a   :  { %v1286_v39 = vpop.f32.mrf.mxu1 }
 0xf4b   :  { %v1296_v40 = vsel %vm457_vm3, %v1292_v37, -inf }
 0xf4c   :  { %1297 = vmax.xlane.f32.xlu0 %v1296_v40  ;;  %v2408_v41 = vpop.f32.mrf.mxu1 }
 0xf59   :  { %1317 = vrot.lane.b32.xlu1 %v3296_v13, %s2953_s1 }
 0xfd1   :  { %v1295_v43 = vpop.xlane.xlu1 %1294 }
 0xfd2   :  { %v1299_v33 = vsub.f32 %v1291_v26, %v1295_v43 }
 0xfd4   :  { %v1301_v28 = vmul.f32 1.442695, %v1299_v33 }
 0xfd5   :  { %v1298_v44 = vpop.xlane.xlu0 %1297  ;;  %v1318_v45 = vpop.permute.xlu1 %1317 }
 0xfd6   :  { %2581 = vpow2.f32 %v1301_v28  ;;  %v1300_v46 = vsub.f32 %v1292_v37, %v1298_v44  ;;  %v1323_v47 = vsel %vm487_vm4, %v1318_v45, 0 }
 0xfd7   :  { %2410 = vmatpush3.bf16.msra.mxu0 %v1323_v47 }
 0xfd8   :  { %v1303_v49 = vmul.f32 1.442695, %v1300_v46  ;;  %2421 = vmatprep.subr.bf16.mxu0 %v2950_v15 }
 0xfda   :  { %2583 = vpow2.f32 %v1303_v49 }
 0xfe3   :  { %v2582_v50 = vpop.eup %2581 }
 0xfe4   :  { %v1305_v51 = vsel %vm457_vm3, %v2582_v50, 0.0 }
 0xfe5   :  { %1306 = vadd.xlane.f32.xlu1 %v1305_v51 }
 0xfe7   :  { %v2584_v52 = vpop.eup %2583 }
 0xfe8   :  { %v1308_v31 = vsel %vm457_vm3, %v2584_v52, 0.0 }
 0xfe9   :  { %1309 = vadd.xlane.f32.xlu0 %v1308_v31  ;;  %v2537_v31 = vld [vmem:[%s3469_s6 + $0x18] sm:$0xff]  }
 0xff6   :  { %1415 = vrot.lane.b32.xlu1 %v3296_v13, %s2954_s24 }
 0xffa   :  { %1465 = vrot.lane.b32.xlu1 %v3300_v18, %s2954_s24 }
 0xffe   :  { %1413 = vrot.lane.b32.xlu1 %v3296_v13, %s2955_s7 }
 0xfff   :  { %1365 = vrot.lane.b32.xlu0 %v3300_v18, %s2953_s1 }
0x1003   :  { %1463 = vrot.lane.b32.xlu0 %v3300_v18, %s2955_s7 }
0x106e   :  { %v1307_v53 = vpop.xlane.xlu1 %1306 }
0x106f   :  { %2585 = vrcp.f32 %v1307_v53  ;;  %v2538_v53 = vld [vmem:[%s3469_s6 + $0x10] sm:$0xff]  }
0x1072   :  { %v1310_v55 = vpop.xlane.xlu0 %1309  ;;  %v1416_v58 = vpop.permute.xlu1 %1415 }
0x1073   :  { %2587 = vrcp.f32 %v1310_v55  ;;  %v1421_v62 = vsel %vm345_vm2, %v1416_v58, 0 }
0x1076   :  { %v1366_v32 = vpop.permute.xlu0 %1365  ;;  %v1466_v0 = vpop.permute.xlu1 %1465 }
0x1077   :  { %v1371_v56 = vsel %vm487_vm4, %v1366_v32, 0  ;;  %v1471_v2 = vsel %vm345_vm2, %v1466_v0, 0 }
0x1078   :  { %2416 = vmatpush3.bf16.msra.mxu1 %v1371_v56 }
0x1079   :  { %2427 = vmatprep.subr.bf16.mxu1 %v2950_v15 }
0x107a   :  { %v1414_v42 = vpop.permute.xlu1 %1413  ;;  %v1464_v3 = vpop.permute.xlu0 %1463 }
0x107c   :  { %v2586_v57 = vpop.eup %2585 }
0x107d   :  { %v1313_v59 = vmul.f32 %v2586_v57, %v2582_v50 }
0x107f   :  { %v1315_v60 = vpack.c.bf16 %v1313_v59, %v1313_v59 }
0x1080   :  { %v2588_v61 = vpop.eup %2587 }
0x1081   :  { %2412 = vmatmul.mubr.msk.bf16.vlgmr.msra.gmra.mxu0 %vm457_vm3, %v1315_v60  ;;  %v1314_v63 = vmul.f32 %v2588_v61, %v2584_v52 }
0x1082   :  { %2422 = vmatpush3.bf16.xpose.msra.mxu0 %v1421_v62  ;;  %2423 = vmatprep.mubr.msk.bf16.mxu0 %vm2951_vm1, %v2950_v15 }
0x1083   :  { %v1316_v1 = vpack.c.bf16 %v1314_v63, %v1314_v63  ;;  %2433 = vmatprep.subr.bf16.mxu0 %v2950_v15 }
0x1085   :  { %2418 = vmatmul.mubr.msk.bf16.vlgmr.msra.gmra.mxu1 %vm457_vm3, %v1316_v1 }
0x1086   :  { %2428 = vmatpush3.bf16.xpose.msra.mxu1 %v1471_v2  ;;  %2429 = vmatprep.mubr.msk.bf16.mxu1 %vm2951_vm1, %v2950_v15 }
0x1087   :  { %2439 = vmatprep.subr.bf16.mxu1 %v2950_v15 }
0x1089   :  { %2424 = vmatmul.mubr.msk.bf16.vlgmr.msra.gmra.mxu0 %vm345_vm2, %v1414_v42 }
0x108a   :  { %2435 = vmatprep.mubr.msk.bf16.mxu0 %vm2951_vm1, %v2950_v15 }
0x108d   :  { %2430 = vmatmul.mubr.msk.bf16.vlgmr.msra.gmra.mxu1 %vm345_vm2, %v1464_v3 }
0x108e   :  { %2441 = vmatprep.mubr.msk.bf16.mxu1 %vm2951_vm1, %v2950_v15 }
0x1141   :  { %v3354_v4 = vpop.f32.mrf.mxu0 }
0x1143   :  { %v2413_v5 = vpop.f32.mrf.mxu0 }
0x1144   :  { %v2201_v5 = vld [vmem:[#allocation11 + $0x1] ss:$0 sm:$0xff] }
0x1145   :  { %v1362_v6 = vpop.f32.mrf.mxu0  ;;  %v3356_v9 = vpop.f32.mrf.mxu1 }
0x1147   :  { %v2414_v10 = vpop.f32.mrf.mxu0  ;;  %v2419_v11 = vpop.f32.mrf.mxu1 }
0x1149   :  { %v1410_v38 = vpop.f32.mrf.mxu1  ;;  %v1457_v12 = vpop.f32.mrf.mxu0 }
0x114a   :  { %v1513_v14 = vmul.f32 0.25, %v1457_v12 }
0x114b   :  { %v2420_v16 = vpop.f32.mrf.mxu1  ;;  %v2425_v17 = vpop.f32.mrf.mxu0 }
0x114c   :  { %v1515_v19 = vadd.f32 %v3157_v48, %v1513_v14 }
0x114d   :  { %v1460_v20 = vpop.f32.mrf.mxu0  ;;  %v1507_v21 = vpop.f32.mrf.mxu1 }
0x114e   :  { %v1514_v22 = vmul.f32 0.25, %v1507_v21  ;;  %v1517_v23 = vsel %vm457_vm3, %v1515_v19, -inf }
0x114f   :  { %v2431_v24 = vpop.f32.mrf.mxu1  ;;  %1518 = vmax.xlane.f32.xlu1 %v1517_v23  ;;  %v2426_v25 = vpop.f32.mrf.mxu0 }
0x1150   :  { %v1516_v26 = vadd.f32 %v3160_v54, %v1514_v22 }
0x1151   :  { %v1510_v27 = vpop.f32.mrf.mxu1 }
0x1152   :  { %v1520_v29 = vsel %vm457_vm3, %v1516_v26, -inf }
0x1153   :  { %1521 = vmax.xlane.f32.xlu0 %v1520_v29  ;;  %v2432_v30 = vpop.f32.mrf.mxu1  ;;  %v2540_v29 = vld [vmem:[%s3473_s10 + $0x10] sm:$0xff]  }
0x1160   :  { %1541 = vrot.lane.b32.xlu1 %v3296_v13, %s2956_s22 }
0x11d8   :  { %v1519_v34 = vpop.xlane.xlu1 %1518 }
0x11d9   :  { %v1523_v48 = vsub.f32 %v1515_v19, %v1519_v34 }
0x11db   :  { %v1525_v35 = vmul.f32 1.442695, %v1523_v48 }
0x11dc   :  { %v1522_v36 = vpop.xlane.xlu0 %1521  ;;  %v1542_v37 = vpop.permute.xlu1 %1541 }
0x11dd   :  { %2589 = vpow2.f32 %v1525_v35  ;;  %v1524_v39 = vsub.f32 %v1516_v26, %v1522_v36  ;;  %v1547_v40 = vsel %vm487_vm4, %v1542_v37, 0 }
0x11de   :  { %2434 = vmatpush3.bf16.msra.mxu0 %v1547_v40 }
0x11df   :  { %v1527_v41 = vmul.f32 1.442695, %v1524_v39  ;;  %2445 = vmatprep.subr.bf16.mxu0 %v2950_v15 }
0x11e1   :  { %2591 = vpow2.f32 %v1527_v41  ;;  %v2205_v41 = vld [vmem:[#allocation13 + $0x1] ss:$0 sm:$0xff] }
0x11ea   :  { %v2590_v54 = vpop.eup %2589 }
0x11eb   :  { %v1529_v43 = vsel %vm457_vm3, %v2590_v54, 0.0 }
0x11ec   :  { %1530 = vadd.xlane.f32.xlu0 %v1529_v43 }
0x11ee   :  { %v2592_v33 = vpop.eup %2591 }
0x11ef   :  { %v1532_v13 = vsel %vm457_vm3, %v2592_v33, 0.0 }
0x11f0   :  { %1533 = vadd.xlane.f32.xlu0 %v1532_v13  ;;  %v2206_v13 = vld [vmem:[#allocation14 + $0x1] ss:$0 sm:$0xff] }
0x1206   :  { %1589 = vrot.lane.b32.xlu0 %v3300_v18, %s2956_s22 }
0x1275   :  { %v1531_v28 = vpop.xlane.xlu0 %1530 }
0x1276   :  { %2593 = vrcp.f32 %v1531_v28 }
0x1279   :  { %v1534_v44 = vpop.xlane.xlu0 %1533 }
0x127a   :  { %2595 = vrcp.f32 %v1534_v44 }
0x127d   :  { %v1590_v45 = vpop.permute.xlu0 %1589 }
0x127e   :  { %v1595_v46 = vsel %vm487_vm4, %v1590_v45, 0 }
0x127f   :  { %2440 = vmatpush3.bf16.msra.mxu1 %v1595_v46 }
0x1280   :  { %2453 = vmatprep.subr.bf16.mxu1 %v2950_v15 }
0x1283   :  { %v2594_v47 = vpop.eup %2593 }
0x1284   :  { %v1537_v49 = vmul.f32 %v2594_v47, %v2590_v54  ;;  %v2541_v47 = vld [vmem:[%s3475_s12 + $0x38] sm:$0xff]  }
0x1286   :  { %v1539_v50 = vpack.c.bf16 %v1537_v49, %v1537_v49  ;;  %v2542_v49 = vld [vmem:[%s3475_s12 + $0x30] sm:$0xff]  }
0x1287   :  { %v2596_v51 = vpop.eup %2595 }
0x1288   :  { %2436 = vmatmul.mubr.msk.bf16.vlgmr.msra.gmra.mxu0 %vm457_vm3, %v1539_v50  ;;  %v1538_v52 = vmul.f32 %v2596_v51, %v2592_v33  ;;  %v2543_v50 = vld [vmem:[%s3475_s12 + $0x28] sm:$0xff]   ;;  %v2544_v51 = vld [vmem:[%s3475_s12 + $0x20] sm:$0xff]  }
0x1289   :  { %2449 = vmatprep.mubr.msk.bf16.mxu0 %vm2951_vm1, %v2950_v15  ;;  %2446 = vmatpush3.bf16.msra.mxu0 %v2537_v31 }
0x128a   :  { %v1540_v18 = vpack.c.bf16 %v1538_v52, %v1538_v52  ;;  %2447 = vmatprep.subr.bf16.mxu0 %v2950_v15  ;;  %v2211_v52 = vld [vmem:[#allocation16 + $0x1] ss:$0 sm:$0xff] }
0x128c   :  { %2442 = vmatmul.mubr.msk.bf16.vlgmr.msra.gmra.mxu1 %vm457_vm3, %v1540_v18 }
0x128d   :  { %2457 = vmatprep.mubr.msk.bf16.mxu1 %vm2951_vm1, %v2950_v15  ;;  %2448 = vmatpush3.bf16.msra.mxu0 %v2538_v53 }
0x128e   :  { %2461 = vmatprep.subr.bf16.mxu0 %v2950_v15 }
0x1348   :  { %v1583_v55 = vpop.f32.mrf.mxu0 }
0x134a   :  { %v2437_v32 = vpop.f32.mrf.mxu0 }
0x134c   :  { %v1586_v56 = vpop.f32.mrf.mxu0  ;;  %v1631_v57 = vpop.f32.mrf.mxu1 }
0x134d   :  { %v2520_v58 = vpack.i.bf16 %v1631_v57, %v1583_v55 }
0x134e   :  { %v2438_v59 = vpop.f32.mrf.mxu0  ;;  %v2443_v60 = vpop.f32.mrf.mxu1 }
0x134f   :  { %2521 = vrot.lane.b32.xlu1 %v2520_v58, %s2934_s27 }
0x1350   :  { %v1634_v61 = vpop.f32.mrf.mxu1 }
0x1352   :  { %v2444_v62 = vpop.f32.mrf.mxu1 }
0x13c1   :  { %v2522_v63 = vpop.permute.xlu1 %2521 }
0x13c2   :  { %v2524_v0 = vunpack.i.h.bf16 %v2522_v63  ;;  %v2523_v1 = vunpack.i.l.bf16 %v2522_v63 }
0x13c4   :  { %v1646_v2 = vsel %vm345_vm2, %v3356_v9, %v2524_v0  ;;  %v1645_v42 = vsel %vm345_vm2, %v3354_v4, %v2523_v1 }
0x13c5   :  { %v1652_v3 = vpack.c.bf16 %v1646_v2, %v1645_v42 }
0x13c7   :  { %2450 = vmatmul.mubr.msk.bf16.vlgmr.msra.gmra.mxu0 %vm228_vm0, %v1652_v3  ;;  %v2223_v3 = vld [vmem:[#allocation17 + $0x1] ss:$0 sm:$0xff] }
0x13c8   :  { %2469 = vmatprep.mubr.msk.bf16.mxu0 %vm2951_vm1, %v2950_v15  ;;  %2462 = vmatpush3.bf16.msra.mxu0 %v2541_v47 }
0x13c9   :  { %2463 = vmatprep.subr.bf16.mxu0 %v2950_v15 }
0x13cc   :  { %2464 = vmatpush3.bf16.msra.mxu0 %v2542_v49  ;;  %v2547_v49 = vld [vmem:[%s3481_s18 + $0x8] sm:$0xff]  }
0x13cd   :  { %2465 = vmatprep.subr.bf16.mxu0 %v2950_v15 }
0x13d0   :  { %2466 = vmatpush3.bf16.msra.mxu0 %v2543_v50  ;;  %v2548_v50 = vld [vmem:[%s3481_s18] sm:$0xff]   ;;  %s2957_s18 = smov [#allocation23]  }
0x13d1   :  { %2467 = vmatprep.subr.bf16.mxu0 %v2950_v15 }
0x13d4   :  { %2468 = vmatpush3.bf16.msra.mxu0 %v2544_v51  ;;  %v2231_v51 = vld [vmem:[#allocation22] ss:$0 sm:$0xff] }
0x1487   :  { %v1707_v6 = vpop.f32.mrf.mxu0 }
0x1488   :  { %v1708_v10 = vadd.f32 %v2201_v5, %v1707_v6 }
0x1489   :  { %v2451_v11 = vpop.f32.mrf.mxu0 }
0x148a   :  { %v1714_v38 = vadd.f32 %v1708_v10, %v3287_v7 }
0x148b   :  { %v1710_v12 = vpop.f32.mrf.mxu0 }
0x148c   :  { %v1711_v14 = vadd.f32 %v2201_v5, %v1710_v12  ;;  %v1718_v16 = vsel %vm228_vm0, %v1714_v38, 0.0 }
0x148d   :  { %1719 = vadd.xlane.f32.xlu1 %v1718_v16  ;;  %v2452_v9 = vpop.f32.mrf.mxu0 }
0x148e   :  { %v1715_v4 = vadd.f32 %v1711_v14, %v3289_v8  ;;  %v2539_v8 = vld [vmem:[%s3473_s10 + $0x18] sm:$0xff]  }
0x148f   :  { %2454 = vmatpush3.bf16.msra.mxu1 %v2539_v8  ;;  %v2546_v8 = vld [vmem:[%s3479_s16] sm:$0xff]  }
0x1490   :  { %v1721_v17 = vsel %vm228_vm0, %v1715_v4, 0.0  ;;  %2455 = vmatprep.subr.bf16.mxu1 %v2950_v15 }
0x1491   :  { %1722 = vadd.xlane.f32.xlu0 %v1721_v17 }
0x1493   :  { %2456 = vmatpush3.bf16.msra.mxu1 %v2540_v29 }
0x1494   :  { %2473 = vmatprep.subr.bf16.mxu1 %v2950_v15 }
0x1516   :  { %v1720_v19 = vpop.xlane.xlu1 %1719 }
0x1517   :  { %v1724_v20 = vmul.f32 0.03125, %v1720_v19 }
0x1519   :  { %v1726_v21 = vsub.f32 %v1714_v38, %v1724_v20 }
0x151a   :  { %v1723_v22 = vpop.xlane.xlu0 %1722 }
0x151b   :  { %v1725_v23 = vmul.f32 0.03125, %v1723_v22  ;;  %v1728_v24 = vmul.f32 %v1726_v21, %v1726_v21 }
0x151d   :  { %v1727_v25 = vsub.f32 %v1715_v4, %v1725_v23  ;;  %v1730_v7 = vsel %vm228_vm0, %v1728_v24, 0.0 }
0x151e   :  { %1731 = vadd.xlane.f32.xlu0 %v1730_v7 }
0x151f   :  { %v1729_v26 = vmul.f32 %v1727_v25, %v1727_v25 }
0x1521   :  { %v1733_v27 = vsel %vm228_vm0, %v1729_v26, 0.0 }
0x1522   :  { %1734 = vadd.xlane.f32.xlu1 %v1733_v27  ;;  %v2545_v27 = vld [vmem:[%s3479_s16 + $0x8] sm:$0xff]  }
0x15a7   :  { %v1732_v30 = vpop.xlane.xlu0 %1731 }
0x15a8   :  { %v1736_v34 = vmul.f32 0.03125, %v1732_v30 }
0x15aa   :  { %v1738_v48 = vadd.f32 1e-05, %v1736_v34 }
0x15ab   :  { %v1735_v35 = vpop.xlane.xlu1 %1734 }
0x15ac   :  { %2597 = vrsqrt.f32 %v1738_v48  ;;  %v1737_v36 = vmul.f32 0.03125, %v1735_v35 }
0x15ae   :  { %v1739_v37 = vadd.f32 1e-05, %v1737_v36 }
0x15b0   :  { %2599 = vrsqrt.f32 %v1739_v37 }
0x15b9   :  { %v2598_v39 = vpop.eup %2597 }
0x15ba   :  { %v1742_v40 = vmul.f32 %v2598_v39, %v1726_v21 }
0x15bc   :  { %v1748_v33 = vmul.f32 %v2205_v41, %v1742_v40 }
0x15bd   :  { %v2600_v54 = vpop.eup %2599 }
0x15be   :  { %v1743_v43 = vmul.f32 %v2600_v54, %v1727_v25  ;;  %v1754_v44 = vadd.f32 %v2206_v13, %v1748_v33 }
0x15c0   :  { %v1749_v28 = vmul.f32 %v2205_v41, %v1743_v43  ;;  %v2229_v41 = vld [vmem:[#allocation19 + $0x1] ss:$0 sm:$0xff] }
0x15c2   :  { %v1755_v45 = vadd.f32 %v2206_v13, %v1749_v28  ;;  %v2230_v13 = vld [vmem:[#allocation20 + $0x1] ss:$0 sm:$0xff] }
0x15c4   :  { %v1761_v46 = vpack.c.bf16 %v1755_v45, %v1754_v44 }
0x15c6   :  { %2458 = vmatmul.mubr.msk.bf16.vlgmr.msra.gmra.mxu1 %vm228_vm0, %v1761_v46 }
0x15c7   :  { %2477 = vmatprep.mubr.msk.bf16.mxu1 %vm2951_vm1, %v2950_v15  ;;  %2474 = vmatpush3.bf16.msra.mxu1 %v2545_v27 }
0x15c8   :  { %2475 = vmatprep.subr.bf16.mxu1 %v2950_v15 }
0x15cb   :  { %2476 = vmatpush3.bf16.msra.mxu1 %v2546_v8 }
0x15cc   :  { %2481 = vmatprep.subr.bf16.mxu1 %v2950_v15 }
0x1686   :  { %v1816_v18 = vpop.f32.mrf.mxu1 }
0x1687   :  { %v1817_v31 = vadd.f32 %v2211_v52, %v1816_v18 }
0x1688   :  { %v2459_v53 = vpop.f32.mrf.mxu1 }
0x1689   :  { %v1825_v55 = vmul.f32 0.70710677, %v1817_v31  ;;  %v1823_v62 = vmul.f32 0.5, %v1817_v31 }
0x168a   :  { %v1819_v32 = vpop.f32.mrf.mxu1 }
0x168b   :  { %2601 = verf.f32 %v1825_v55  ;;  %v1820_v56 = vadd.f32 %v2211_v52, %v1819_v32 }
0x168c   :  { %v2460_v57 = vpop.f32.mrf.mxu1 }
0x168d   :  { %v1826_v58 = vmul.f32 0.70710677, %v1820_v56  ;;  %v1824_v63 = vmul.f32 0.5, %v1820_v56 }
0x168f   :  { %2603 = verf.f32 %v1826_v58 }
0x1698   :  { %v2602_v59 = vpop.eup %2601 }
0x1699   :  { %v1829_v60 = vadd.f32 1.0, %v2602_v59 }
0x169b   :  { %v1831_v1 = vmul.f32 %v1829_v60, %v1823_v62 }
0x169c   :  { %v2604_v61 = vpop.eup %2603 }
0x169d   :  { %v1830_v0 = vadd.f32 1.0, %v2604_v61 }
0x169f   :  { %v1832_v2 = vmul.f32 %v1830_v0, %v1824_v63 }
0x16a1   :  { %v1842_v42 = vpack.c.bf16 %v1832_v2, %v1831_v1 }
0x16a3   :  { %2470 = vmatmul.mubr.msk.bf16.vlgmr.msra.gmra.mxu0 %vm1035_vm5, %v1842_v42 }
0x1763   :  { %v1909_v5 = vpop.f32.mrf.mxu0 }
0x1764   :  { %v1910_v6 = vadd.f32 %v2223_v3, %v1909_v5 }
0x1765   :  { %v2471_v10 = vpop.f32.mrf.mxu0 }
0x1766   :  { %v1916_v11 = vadd.f32 %v1910_v6, %v1754_v44 }
0x1767   :  { %v1912_v38 = vpop.f32.mrf.mxu0 }
0x1768   :  { %v1913_v12 = vadd.f32 %v2223_v3, %v1912_v38  ;;  %v1920_v14 = vsel %vm228_vm0, %v1916_v11, 0.0 }
0x1769   :  { %1921 = vadd.xlane.f32.xlu1 %v1920_v14  ;;  %v2472_v16 = vpop.f32.mrf.mxu0 }
0x176a   :  { %v1917_v9 = vadd.f32 %v1913_v12, %v1755_v45 }
0x176c   :  { %v1923_v4 = vsel %vm228_vm0, %v1917_v9, 0.0 }
0x176d   :  { %1924 = vadd.xlane.f32.xlu0 %v1923_v4 }
0x17f2   :  { %v1922_v17 = vpop.xlane.xlu1 %1921 }
0x17f3   :  { %v1926_v19 = vmul.f32 0.03125, %v1922_v17 }
0x17f5   :  { %v1928_v20 = vsub.f32 %v1916_v11, %v1926_v19 }
0x17f6   :  { %v1925_v21 = vpop.xlane.xlu0 %1924 }
0x17f7   :  { %v1927_v22 = vmul.f32 0.03125, %v1925_v21  ;;  %v1930_v23 = vmul.f32 %v1928_v20, %v1928_v20 }
0x17f9   :  { %v1929_v24 = vsub.f32 %v1917_v9, %v1927_v22  ;;  %v1932_v25 = vsel %vm228_vm0, %v1930_v23, 0.0 }
0x17fa   :  { %1933 = vadd.xlane.f32.xlu1 %v1932_v25 }
0x17fb   :  { %v1931_v7 = vmul.f32 %v1929_v24, %v1929_v24 }
0x17fd   :  { %v1935_v26 = vsel %vm228_vm0, %v1931_v7, 0.0 }
0x17fe   :  { %1936 = vadd.xlane.f32.xlu0 %v1935_v26 }
0x1883   :  { %v1934_v29 = vpop.xlane.xlu1 %1933 }
0x1884   :  { %v1938_v30 = vmul.f32 0.03125, %v1934_v29 }
0x1886   :  { %v1940_v34 = vadd.f32 1e-05, %v1938_v30 }
0x1887   :  { %v1937_v48 = vpop.xlane.xlu0 %1936 }
0x1888   :  { %2605 = vrsqrt.f32 %v1940_v34  ;;  %v1939_v35 = vmul.f32 0.03125, %v1937_v48 }
0x188a   :  { %v1941_v36 = vadd.f32 1e-05, %v1939_v35 }
0x188c   :  { %2607 = vrsqrt.f32 %v1941_v36 }
0x1895   :  { %v2606_v37 = vpop.eup %2605 }
0x1896   :  { %v1944_v39 = vmul.f32 %v2606_v37, %v1928_v20 }
0x1898   :  { %v1950_v43 = vmul.f32 %v2229_v41, %v1944_v39 }
0x1899   :  { %v2608_v40 = vpop.eup %2607 }
0x189a   :  { %v1945_v54 = vmul.f32 %v2608_v40, %v1929_v24  ;;  %v1956_v44 = vadd.f32 %v2230_v13, %v1950_v43 }
0x189c   :  { %v1951_v33 = vmul.f32 %v2229_v41, %v1945_v54 }
0x189e   :  { %v1957_v28 = vadd.f32 %v2230_v13, %v1951_v33 }
0x18a0   :  { %v1959_v45 = vrot.slane %v1957_v28, 7 }
0x18a2   :  { %v1962_v46 = vsel %vm1961_vm6, %v1956_v44, %v1959_v45 }
0x18a3   :  { %v1967_v47 = vpack.c.bf16 %v1962_v46, %v1962_v46 }
0x18a5   :  { %2478 = vmatmul.mubr.msk.bf16.vlgmr.msra.gmra.mxu1 %vm228_vm0, %v1967_v47 }
0x18a6   :  { %2485 = vmatprep.mubr.msk.bf16.mxu1 %vm2951_vm1, %v2950_v15  ;;  %2482 = vmatpush3.bf16.msra.mxu1 %v2547_v49 }
0x18a7   :  { %2483 = vmatprep.subr.bf16.mxu1 %v2950_v15  ;;  %v2235_v15 = vld [vmem:[%s3482_s19] ss:$0 sm:$0xff]  ;;  %s2118_s19 = sshll.u32 %s2957_s18, 4  ;;  %s2119_s19 = int_to_ptr.vmem [resolvable:$true] %s2118_s19 }
0x18a8   :  { %s2875_s28 = scalar_lea.vmem %s2119_s19, 32  ;;  %p2880_p10 = scmp.lt.s32.totalorder %s2119_s19, %s2119_s19 }
0x18a9   :  { %p2876_p9 = scmp.ne.s32.totalorder %s2119_s19, %s2875_s28  ;;  %p2881_p11 = scmp.lt.s32.totalorder %s2875_s28, %s2875_s28 }
0x18aa   :  { %2484 = vmatpush3.bf16.msra.mxu1 %v2548_v50 }
0x18ab   :  { %p2882_p12 = por %p2881_p11, %p2880_p10 }
0x18ad   :  { %p2883_p13 = pnand %p2882_p12, %p2876_p9 }
0x1965   :  { %v2024_v52 = vpop.f32.mrf.mxu1 }
0x1966   :  { %v2025_v18 = vadd.f32 %v2231_v51, %v2024_v52 }
0x1967   :  { %v2479_v31 = vpop.f32.mrf.mxu1 }
0x1968   :  { %2609 = vtanh.f32 %v2025_v18 }
0x1969   :  { %v2027_v53 = vpop.f32.mrf.mxu1 }
0x196b   :  { %v2480_v55 = vpop.f32.mrf.mxu1 }
0x1975   :  { %v2610_v32 = vpop.eup %2609 }
0x1976   :  { %v2035_v56 = vpack.c.bf16 %v2610_v32, %v2610_v32 }
0x1978   :  { %2486 = vmatmul.mubr.msk.bf16.vlgmr.msra.gmra.mxu1 %vm228_vm0, %v2035_v56 }
0x1a38   :  { %v2092_v57 = vpop.f32.mrf.mxu1 }
0x1a39   :  { %v2093_v58 = vadd.f32 %v2235_v15, %v2092_v57 }
0x1a3a   :  { %v2487_v59 = vpop.f32.mrf.mxu1 }
0x1a3b   :  { %v2100_v60 = vsel %vm2098_vm7, %v2093_v58, -inf  ;;  %2099 = vst.msk [vmem:[#allocation23] sm:$0x3] %vm2098_vm7, %v2093_v58 }
0x1a3c   :  { %2101 = vmax.xlane.f32.xlu0 %v2100_v60  ;;  %v2095_v61 = vpop.f32.mrf.mxu1 }
0x1a3e   :  { %v2488_v62 = vpop.f32.mrf.mxu1 }
0x1ac5   :  { %v2102_v63 = vpop.xlane.xlu0 %2101 }
0x1ac6   :  { %v2103_v0 = vsub.f32 %v2093_v58, %v2102_v63 }
0x1ac8   :  { %v2104_v1 = vmul.f32 1.442695, %v2103_v0 }
0x1aca   :  { %2611 = vpow2.f32 %v2104_v1 }
0x1ad7   :  { %v2612_v2 = vpop.eup %2611 }
0x1ad8   :  { %v2106_v42 = vsel %vm2098_vm7, %v2612_v2, 0.0 }
0x1ad9   :  { %2107 = vadd.xlane.f32.xlu1 %v2106_v42 }
0x1ada   :  { %2886 = shalt.err (!%p2883_p13)
}
0x1adb   :  { %2121 = dma.vmem_to_hbm [thread:$0]  %s2119_s19, 32, %s3483_s20, [#allocation4]  }
0x1adc   :  { %s2958_s1 = smov [#allocation24]  }
0x1add   :  { %s2128_s24 = sshll.u32 %s2958_s1, 4  ;;  %s2129_s24 = int_to_ptr.vmem [resolvable:$true] %s2128_s24 }
0x1ade   :  { %s2895_s6 = scalar_lea.vmem %s2129_s24, 32  ;;  %p2900_p1 = scmp.lt.s32.totalorder %s2129_s24, %s2129_s24 }
0x1adf   :  { %p2896_p0 = scmp.ne.s32.totalorder %s2129_s24, %s2895_s6  ;;  %p2901_p2 = scmp.lt.s32.totalorder %s2895_s6, %s2895_s6 }
0x1ae1   :  { %p2902_p3 = por %p2901_p2, %p2900_p1 }
0x1ae3   :  { %p2903_p4 = pnand %p2902_p3, %p2896_p0 }
0x1b62   :  { %v2108_v3 = vpop.xlane.xlu1 %2107 }
0x1b63   :  { %2613 = vrcp.f32 %v2108_v3 }
0x1b70   :  { %v2614_v5 = vpop.eup %2613 }
0x1b71   :  { %v2110_v6 = vmul.f32 %v2614_v5, %v2612_v2 }
0x1b73   :  { %2111 = vst.msk [vmem:[#allocation24] sm:$0x3] %vm2098_vm7, %v2110_v6 }
0x1b74   :  { %2906 = shalt.err (!%p2903_p4)
}
0x1b75   :  { %2131 = dma.vmem_to_hbm [thread:$0]  %s2129_s24, 32, %s3484_s21, [#allocation25]  }
0x1b76   :  { %2929 = dma.done.wait [#allocation4], 32  }
0x1b77   :  { %2930 = vsyncadd [#allocation4], 4294967264 }
0x1b78   :  { %2931 = dma.done.wait [#allocation25], 32  }
0x1b79   :  { %2932 = vsyncadd [#allocation25], 4294967264 }
0x1b7a   :  { %2138 = vsyncpa [#allocation3], 1 }
0x1b7b   :  { %2139 = vsyncpa [#allocation6], 1 }
0x1b7c   :  { %2140 = vsyncpa [#allocation9], 1 }
0x1b7d   :  { %2141 = vsyncpa [#allocation12], 1 }
0x1b7e   :  { %2142 = vsyncpa [#allocation15], 1 }
0x1b7f   :  { %2143 = vsyncpa [#allocation18], 1 }
0x1b80   :  { %2144 = vsyncpa [#allocation21], 1 }
0x1b81   :  { %2145 = vsyncpa [#allocation4], 1 }
0x1b82   :  { %2146 = vsyncpa [#allocation25], 1 }

</bundles_post_ra>
